<compile_context>
chip_gen: v5e
topology: v5e:2x2
jax: 0.10.0
libtpu: 0.0.40
codegen_flags: <defaults>
</compile_context>

<pallas_src>
import functools
import numpy as np
import jax
import jax.numpy as jnp
from jax.experimental import pallas as pl
from jax.experimental.pallas import tpu as pltpu


# --------------------------------------------------------------------------
# Pallas kernel: one (batch, split, Nx-tile) grid step, channel-major.
# --------------------------------------------------------------------------
def _oab_kernel(x_ref, proxy_ref,
                wp1_ref, bp1_ref, wp2_ref, bp2_ref,     # f_pixel  (attn scale folded into stage 2)
                wo1_ref, bo1_ref, wo2_ref, bo2_ref,     # f_object
                wd_ref, bd_ref,                         # f_down
                wu_ref, bu_ref,                         # f_up
                out_ref,
                k_scr, v_scr,
                *, compute_dtype):
    # x_ref:(C_in, TN) bf16 | proxy_ref:(C_in, Np) bf16 | W:(C_out, C_in) bf16
    # biases:(C_out, 1) f32 | out_ref:(C_in, TN) bf16
    # k_scr:(Np, Ck) bf16, v_scr:(Ck, Np) bf16 -- persist across the Nx-tile axis.
    f32 = jnp.float32
    relu = lambda z: jnp.maximum(z, 0.0)

    def proj(w_ref, b_ref, inp):
        z = jnp.dot(w_ref[...], inp, preferred_element_type=f32) + b_ref[...]
        return relu(z)

    # --- key / value from proxy: once per (batch, split) (first Nx tile) ------
    @pl.when(pl.program_id(2) == 0)
    def _():
        p = proxy_ref[...]                                        # (C_in, Np)
        k1 = proj(wo1_ref, bo1_ref, p).astype(compute_dtype)
        k = proj(wo2_ref, bo2_ref, k1)                            # (Ck, Np) f32
        # cast BEFORE the XLU transpose; stored once, reused by every tile
        k_scr[...] = k.astype(compute_dtype).T                    # (Np, Ck)
        v = proj(wd_ref, bd_ref, p)                               # (Ck, Np) f32
        v_scr[...] = v.astype(compute_dtype)

    # --- query for this Nx tile ----------------------------------------------
    x = x_ref[...]                                                # (C_in, TN)
    q1 = proj(wp1_ref, bp1_ref, x).astype(compute_dtype)
    q = proj(wp2_ref, bp2_ref, q1).astype(compute_dtype)          # (Ck, TN), 1/sqrt(Ck) folded in

    # --- attention: sim (Np, TN), softmax over the object axis (axis 0) -------
    sim = jnp.dot(k_scr[...], q, preferred_element_type=f32)      # (Np, TN)
    sim = sim - jnp.max(sim, axis=0, keepdims=True)
    e = jnp.exp(sim)
    probs = e * pl.reciprocal(jnp.sum(e, axis=0, keepdims=True), approx=True)

    ctx = jnp.dot(v_scr[...], probs.astype(compute_dtype),
                  preferred_element_type=f32)                     # (Ck, TN)

    # --- f_up -----------------------------------------------------------------
    out = relu(jnp.dot(wu_ref[...], ctx.astype(compute_dtype),
                       preferred_element_type=f32) + bu_ref[...])
    out_ref[...] = out.astype(out_ref.dtype)                      # downcast to bf16


# --------------------------------------------------------------------------
# Parameter setup / BN folding (glue).  Channel-major: W (c_out, c_in), b (c_out, 1)
# --------------------------------------------------------------------------
def _make_conv_bn(key, c_in, c_out, eps=1e-5):
    k1, k2, k3, k4, k5 = jax.random.split(key, 5)
    w = jax.random.normal(k1, (c_out, c_in), jnp.float32) * 0.2   # conv (out,in,1,1) squeezed
    gamma = 1.0 + 0.1 * jax.random.normal(k2, (c_out,), jnp.float32)
    beta = 0.1 * jax.random.normal(k3, (c_out,), jnp.float32)
    mean = 0.1 * jax.random.normal(k4, (c_out,), jnp.float32)
    var = 1.0 + 0.1 * jax.random.uniform(k5, (c_out,), jnp.float32)
    scale = gamma / jnp.sqrt(var + eps)
    w_eff = w * scale[:, None]                  # (c_out, c_in)
    b_eff = (beta - mean * scale)[:, None]      # (c_out, 1)
    return w_eff, b_eff


def init_params(key, in_channels, key_channels):
    keys = jax.random.split(key, 6)
    wp1, bp1 = _make_conv_bn(keys[0], in_channels, key_channels)
    wp2, bp2 = _make_conv_bn(keys[1], key_channels, key_channels)
    wo1, bo1 = _make_conv_bn(keys[2], in_channels, key_channels)
    wo2, bo2 = _make_conv_bn(keys[3], key_channels, key_channels)
    wd, bd = _make_conv_bn(keys[4], in_channels, key_channels)
    wu, bu = _make_conv_bn(keys[5], key_channels, in_channels)
    return (wp1, bp1, wp2, bp2, wo1, bo1, wo2, bo2, wd, bd, wu, bu)


# --------------------------------------------------------------------------
# Per-generation VMEM budget + tile selection
# --------------------------------------------------------------------------
def _vmem_budget_bytes():
    try:
        cap = int(pltpu.get_tpu_info().vmem_capacity_bytes)
    except Exception:
        cap = 64 * 1024 * 1024          # conservative (v7x-sized) fallback
    limit = min(cap * 3 // 4, 96 * 1024 * 1024)   # ~96 MiB on 128 MiB parts, ~48 MiB on v7x
    return max(limit, 32 * 1024 * 1024)


def _pick_tile_n(nx, c_in, c_key, n_proxy, vmem_limit_bytes):
    """Largest lane-dense Nx tile whose (double-buffered I/O + in-kernel
    intermediate) estimate fits within a fraction of the scoped VMEM budget."""
    if nx % 128 != 0:
        return nx                        # block == full dim is always legal
    budget = int(vmem_limit_bytes * 0.6)
    # fixed residents: weights (bf16, <=2 bufs), lane-padded f32 biases,
    # proxy buffers, K/V scratch.
    fixed = (2 * c_in * c_key + 2 * c_key * c_key + c_key * c_in) * 2 * 2
    fixed += 6 * max(c_in, c_key) * 128 * 4
    fixed += 2 * c_in * n_proxy * 2 + 2 * c_key * n_proxy * 2
    budget -= fixed
    per_lane = (
        2 * c_in * 2        # x tile bf16, double-buffered
        + 2 * c_in * 2      # out tile bf16, double-buffered
        + 4 * c_key * 4     # q1 / q / ctx f32 intermediates
        + 3 * n_proxy * 4   # sim / exp / probs
        + c_in * 4          # f_up output before downcast
    )
    per_lane = int(per_lane * 1.5)       # layout-padding / compiler-temp fudge
    for t in (4096, 2048, 1024, 512, 256, 128):
        if nx % t == 0 and t * per_lane <= budget:
            return t
    return 128


# --------------------------------------------------------------------------
# Wrapper
# --------------------------------------------------------------------------
def object_attention_block_2d(x_nchw, proxy_nchw, params, in_channels, key_channels,
                              scale=1, compute_dtype=jnp.bfloat16):
    assert scale == 1, "only scale=1 supported"
    # TODO(synk): scale>1 path (MaxPool2d + bilinear align_corners interpolate) not implemented.

    B, C, H, W = x_nchw.shape
    _, _, Hp, Wp = proxy_nchw.shape
    Nx, Np = H * W, Hp * Wp

    # Channel-major (B, C, N): plain reshape of NCHW, no HBM transposes.
    x = x_nchw.reshape(B, C, Nx).astype(compute_dtype)
    proxy = proxy_nchw.reshape(B, C, Np).astype(compute_dtype)

    (wp1, bp1, wp2, bp2, wo1, bo1, wo2, bo2, wd, bd, wu, bu) = params
    # Fold the 1/sqrt(Ck) attention scale into the second f_pixel stage
    # (relu(s*z) == s*relu(z) for s>0) -> no per-element scaling in the kernel.
    att_scale = float(key_channels) ** -0.5
    wp2 = wp2 * att_scale
    bp2 = bp2 * att_scale

    ws = [w.astype(compute_dtype) for w in (wp1, wp2, wo1, wo2, wd, wu)]
    bs = [b.astype(jnp.float32) for b in (bp1, bp2, bo1, bo2, bd, bu)]
    wp1, wp2, wo1, wo2, wd, wu = ws
    bp1, bp2, bo1, bo2, bd, bu = bs

    vmem_limit = _vmem_budget_bytes()
    tile_n = _pick_tile_n(Nx, in_channels, key_channels, Np, vmem_limit)
    tiles = Nx // tile_n

    # Cover both v7x TensorCores when the batch axis alone can't (B odd / B==1):
    # add a second "parallel" axis over halves of the spatial axis.
    n_split = 2 if (B % 2 == 1 and tiles >= 2 and tiles % 2 == 0) else 1
    inner_tiles = tiles // n_split
    grid = (B, n_split, inner_tiles)

    kernel = functools.partial(_oab_kernel, compute_dtype=compute_dtype)

    def _call(single_buffer_invariants):
        def const_spec(arr):
            if single_buffer_invariants:
                # Grid-invariant weights/biases: one VMEM buffer is enough.
                return pl.BlockSpec(arr.shape, lambda b, s, t: (0, 0),
                                    pipeline_mode=pl.Buffered(1))
            return pl.BlockSpec(arr.shape, lambda b, s, t: (0, 0))

        x_spec = pl.BlockSpec((pl.Squeezed(), in_channels, tile_n),
                              lambda b, s, t: (b, 0, s * inner_tiles + t))
        proxy_spec = pl.BlockSpec((pl.Squeezed(), in_channels, Np),
                                  lambda b, s, t: (b, 0, 0))
        out_spec = pl.BlockSpec((pl.Squeezed(), in_channels, tile_n),
                                lambda b, s, t: (b, 0, s * inner_tiles + t))

        f = pl.pallas_call(
            kernel,
            out_shape=jax.ShapeDtypeStruct((B, in_channels, Nx), compute_dtype),
            grid_spec=pltpu.PrefetchScalarGridSpec(
                num_scalar_prefetch=0,
                grid=grid,
                in_specs=[
                    x_spec, proxy_spec,
                    const_spec(wp1), const_spec(bp1), const_spec(wp2), const_spec(bp2),
                    const_spec(wo1), const_spec(bo1), const_spec(wo2), const_spec(bo2),
                    const_spec(wd), const_spec(bd),
                    const_spec(wu), const_spec(bu),
                ],
                out_specs=out_spec,
                scratch_shapes=[
                    pltpu.VMEM((Np, key_channels), compute_dtype),   # key^T  (Np, Ck)
                    pltpu.VMEM((key_channels, Np), compute_dtype),   # value  (Ck, Np)
                ],
            ),
            compiler_params=pltpu.CompilerParams(
                dimension_semantics=("parallel", "parallel", "arbitrary"),
                vmem_limit_bytes=vmem_limit,
            ),
        )
        out = f(x, proxy, wp1, bp1, wp2, bp2, wo1, bo1, wo2, bo2, wd, bd, wu, bu)
        return jax.block_until_ready(out)

    try:
        out = _call(True)
    except Exception:
        # Fallback if this JAX build rejects pipeline_mode=pl.Buffered(1).
        out = _call(False)

    return out.reshape(B, in_channels, H, W)


# --------------------------------------------------------------------------
# Pure-JAX reference (mirrors the PyTorch forward + the kernel's mixed precision)
# --------------------------------------------------------------------------
def reference(x_nchw, proxy_nchw, params, in_channels, key_channels,
              compute_dtype=jnp.bfloat16):
    B, C, H, W = x_nchw.shape
    _, _, Hp, Wp = proxy_nchw.shape
    x = x_nchw.reshape(B, C, H * W).astype(compute_dtype)
    p = proxy_nchw.reshape(B, C, Hp * Wp).astype(compute_dtype)
    (wp1, bp1, wp2, bp2, wo1, bo1, wo2, bo2, wd, bd, wu, bu) = params
    relu = lambda z: jnp.maximum(z, 0.0)

    def proj(w, b, inp):
        z = jnp.einsum("oc,bcn->bon", w.astype(compute_dtype), inp,
                       preferred_element_type=jnp.float32) + b[None]
        return relu(z)

    q = proj(wp2, bp2, proj(wp1, bp1, x).astype(compute_dtype))       # (B, Ck, Nx)
    k = proj(wo2, bo2, proj(wo1, bo1, p).astype(compute_dtype))       # (B, Ck, Np)
    v = proj(wd, bd, p)                                               # (B, Ck, Np)
    sim = jnp.einsum("bcm,bcn->bmn", k.astype(compute_dtype), q.astype(compute_dtype),
                     preferred_element_type=jnp.float32)              # (B, Np, Nx)
    sim = sim * float(key_channels) ** -0.5
    probs = jax.nn.softmax(sim, axis=1)                               # softmax over object axis
    ctx = jnp.einsum("bcm,bmn->bcn", v.astype(compute_dtype), probs.astype(compute_dtype),
                     preferred_element_type=jnp.float32)              # (B, Ck, Nx)
    out = proj(wu, bu, ctx.astype(compute_dtype))                     # (B, C, Nx)
    return out.reshape(B, in_channels, H, W)


if __name__ == "__main__":
    in_channels = 8
    key_channels = 16
    B, H, W = 2, 16, 16
    Kp = 8  # number of object-region "pixels" (proxy is B x C x Kp x 1)

    root = jax.random.PRNGKey(0)
    kx, kp, kw = jax.random.split(root, 3)
    x = jax.random.normal(kx, (B, in_channels, H, W), jnp.float32)
    proxy = jax.random.normal(kp, (B, in_channels, Kp, 1), jnp.float32)

    params = init_params(kw, in_channels, key_channels)

    out = object_attention_block_2d(x, proxy, params, in_channels, key_channels, scale=1)
    out = jax.block_until_ready(out)

    ref = reference(x, proxy, params, in_channels, key_channels)
    # Kernel emits bf16; quantize the reference identically before comparing.
    ref_q = ref.astype(jnp.bfloat16).astype(jnp.float32)
    np.testing.assert_allclose(np.asarray(out, dtype=np.float32),
                               np.asarray(ref_q), rtol=2e-2, atol=2e-2)

    print("KERNEL_OK")
</pallas_src>

<mosaic_0001>
module attributes {stable_mosaic.version = 11 : i64} {
  func.func @_oab_kernel(%arg0: i32, %arg1: i32, %arg2: i32, %arg3: memref<1x8x256xbf16, #tpu.memory_space<vmem>>, %arg4: memref<1x8x8xbf16, #tpu.memory_space<vmem>>, %arg5: memref<16x8xbf16, #tpu.memory_space<vmem>>, %arg6: memref<16x1xf32, #tpu.memory_space<vmem>>, %arg7: memref<16x16xbf16, #tpu.memory_space<vmem>>, %arg8: memref<16x1xf32, #tpu.memory_space<vmem>>, %arg9: memref<16x8xbf16, #tpu.memory_space<vmem>>, %arg10: memref<16x1xf32, #tpu.memory_space<vmem>>, %arg11: memref<16x16xbf16, #tpu.memory_space<vmem>>, %arg12: memref<16x1xf32, #tpu.memory_space<vmem>>, %arg13: memref<16x8xbf16, #tpu.memory_space<vmem>>, %arg14: memref<16x1xf32, #tpu.memory_space<vmem>>, %arg15: memref<8x16xbf16, #tpu.memory_space<vmem>>, %arg16: memref<8x1xf32, #tpu.memory_space<vmem>>, %arg17: memref<1x8x256xbf16, #tpu.memory_space<vmem>>, %arg18: memref<8x16xbf16, #tpu.memory_space<vmem>>, %arg19: memref<16x8xbf16, #tpu.memory_space<vmem>>) attributes {dimension_semantics = [#tpu.dimension_semantics<parallel>, #tpu.dimension_semantics<parallel>, #tpu.dimension_semantics<arbitrary>], iteration_bounds = array<i64: 2, 1, 1>, scalar_prefetch = 0 : i64, scratch_operands = 2 : i64, tpu.core_type = #tpu.core_type<tc>, window_params = [{transform_indices = @transform_0, window_bounds = array<i64: 1, 8, 256>}, {transform_indices = @transform_1, window_bounds = array<i64: 1, 8, 8>}, {pipeline_mode = #tpu.pipeline_mode<synchronous>, transform_indices = @transform_2, window_bounds = array<i64: 16, 8>}, {pipeline_mode = #tpu.pipeline_mode<synchronous>, transform_indices = @transform_3, window_bounds = array<i64: 16, 1>}, {pipeline_mode = #tpu.pipeline_mode<synchronous>, transform_indices = @transform_4, window_bounds = array<i64: 16, 16>}, {pipeline_mode = #tpu.pipeline_mode<synchronous>, transform_indices = @transform_5, window_bounds = array<i64: 16, 1>}, {pipeline_mode = #tpu.pipeline_mode<synchronous>, transform_indices = @transform_6, window_bounds = array<i64: 16, 8>}, {pipeline_mode = #tpu.pipeline_mode<synchronous>, transform_indices = @transform_7, window_bounds = array<i64: 16, 1>}, {pipeline_mode = #tpu.pipeline_mode<synchronous>, transform_indices = @transform_8, window_bounds = array<i64: 16, 16>}, {pipeline_mode = #tpu.pipeline_mode<synchronous>, transform_indices = @transform_9, window_bounds = array<i64: 16, 1>}, {pipeline_mode = #tpu.pipeline_mode<synchronous>, transform_indices = @transform_10, window_bounds = array<i64: 16, 8>}, {pipeline_mode = #tpu.pipeline_mode<synchronous>, transform_indices = @transform_11, window_bounds = array<i64: 16, 1>}, {pipeline_mode = #tpu.pipeline_mode<synchronous>, transform_indices = @transform_12, window_bounds = array<i64: 8, 16>}, {pipeline_mode = #tpu.pipeline_mode<synchronous>, transform_indices = @transform_13, window_bounds = array<i64: 8, 1>}, {transform_indices = @transform_14, window_bounds = array<i64: 1, 8, 256>}]} {
    %c0_i32 = arith.constant 0 : i32
    %0 = arith.cmpi eq, %arg2, %c0_i32 : i32
    %1 = arith.extui %0 : i1 to i32
    %c0_i32_0 = arith.constant 0 : i32
    %2 = arith.cmpi ne, %1, %c0_i32_0 : i32
    scf.if %2 {
      %c0_31 = arith.constant 0 : index
      %c0_32 = arith.constant 0 : index
      %c0_33 = arith.constant 0 : index
      %48 = vector.load %arg4[%c0_31, %c0_32, %c0_33] : memref<1x8x8xbf16, #tpu.memory_space<vmem>>, vector<1x8x8xbf16>
      %49 = vector.shape_cast %48 : vector<1x8x8xbf16> to vector<8x8xbf16>
      %c0_34 = arith.constant 0 : index
      %c0_35 = arith.constant 0 : index
      %50 = vector.load %arg9[%c0_34, %c0_35] : memref<16x8xbf16, #tpu.memory_space<vmem>>, vector<16x8xbf16>
      %cst_36 = arith.constant dense<0.000000e+00> : vector<16x8xf32>
      %51 = tpu.matmul %50, %49, %cst_36 {dimension_numbers = #tpu.dot_dimension_numbers<[1], [0], [0], [1], [0, 0, 1, 1], [], []>} : vector<16x8xbf16>, vector<8x8xbf16>, vector<16x8xf32> -> vector<16x8xf32>
      %c0_37 = arith.constant 0 : index
      %c0_38 = arith.constant 0 : index
      %52 = vector.load %arg10[%c0_37, %c0_38] : memref<16x1xf32, #tpu.memory_space<vmem>>, vector<16x1xf32>
      %53 = vector.broadcast %52 : vector<16x1xf32> to vector<16x8xf32>
      %54 = arith.addf %51, %53 : vector<16x8xf32>
      %cst_39 = arith.constant 0.000000e+00 : f32
      %55 = vector.broadcast %cst_39 : f32 to vector<16x8xf32>
      %56 = arith.maximumf %54, %55 : vector<16x8xf32>
      %57 = arith.truncf %56 : vector<16x8xf32> to vector<16x8xbf16>
      %c0_40 = arith.constant 0 : index
      %c0_41 = arith.constant 0 : index
      %58 = vector.load %arg11[%c0_40, %c0_41] : memref<16x16xbf16, #tpu.memory_space<vmem>>, vector<16x16xbf16>
      %cst_42 = arith.constant dense<0.000000e+00> : vector<16x8xf32>
      %59 = tpu.matmul %58, %57, %cst_42 {dimension_numbers = #tpu.dot_dimension_numbers<[1], [0], [0], [1], [0, 0, 1, 1], [], []>} : vector<16x16xbf16>, vector<16x8xbf16>, vector<16x8xf32> -> vector<16x8xf32>
      %c0_43 = arith.constant 0 : index
      %c0_44 = arith.constant 0 : index
      %60 = vector.load %arg12[%c0_43, %c0_44] : memref<16x1xf32, #tpu.memory_space<vmem>>, vector<16x1xf32>
      %61 = vector.broadcast %60 : vector<16x1xf32> to vector<16x8xf32>
      %62 = arith.addf %59, %61 : vector<16x8xf32>
      %cst_45 = arith.constant 0.000000e+00 : f32
      %63 = vector.broadcast %cst_45 : f32 to vector<16x8xf32>
      %64 = arith.maximumf %62, %63 : vector<16x8xf32>
      %65 = arith.truncf %64 : vector<16x8xf32> to vector<16x8xbf16>
      %66 = tpu.transpose %65, [1, 0] : vector<16x8xbf16> -> vector<8x16xbf16>
      %c0_46 = arith.constant 0 : index
      %c0_47 = arith.constant 0 : index
      %67 = vector.load %arg18[%c0_46, %c0_47] : memref<8x16xbf16, #tpu.memory_space<vmem>>, vector<8x16xbf16>
      tpu.vector_store %arg18[%c0_46, %c0_47], %66 {strides = array<i32>} : memref<8x16xbf16, #tpu.memory_space<vmem>>, vector<8x16xbf16>,
      %c0_48 = arith.constant 0 : index
      %c0_49 = arith.constant 0 : index
      %68 = vector.load %arg13[%c0_48, %c0_49] : memref<16x8xbf16, #tpu.memory_space<vmem>>, vector<16x8xbf16>
      %cst_50 = arith.constant dense<0.000000e+00> : vector<16x8xf32>
      %69 = tpu.matmul %68, %49, %cst_50 {dimension_numbers = #tpu.dot_dimension_numbers<[1], [0], [0], [1], [0, 0, 1, 1], [], []>} : vector<16x8xbf16>, vector<8x8xbf16>, vector<16x8xf32> -> vector<16x8xf32>
      %c0_51 = arith.constant 0 : index
      %c0_52 = arith.constant 0 : index
      %70 = vector.load %arg14[%c0_51, %c0_52] : memref<16x1xf32, #tpu.memory_space<vmem>>, vector<16x1xf32>
      %71 = vector.broadcast %70 : vector<16x1xf32> to vector<16x8xf32>
      %72 = arith.addf %69, %71 : vector<16x8xf32>
      %cst_53 = arith.constant 0.000000e+00 : f32
      %73 = vector.broadcast %cst_53 : f32 to vector<16x8xf32>
      %74 = arith.maximumf %72, %73 : vector<16x8xf32>
      %75 = arith.truncf %74 : vector<16x8xf32> to vector<16x8xbf16>
      %c0_54 = arith.constant 0 : index
      %c0_55 = arith.constant 0 : index
      %76 = vector.load %arg19[%c0_54, %c0_55] : memref<16x8xbf16, #tpu.memory_space<vmem>>, vector<16x8xbf16>
      tpu.vector_store %arg19[%c0_54, %c0_55], %75 {strides = array<i32>} : memref<16x8xbf16, #tpu.memory_space<vmem>>, vector<16x8xbf16>,
    } else {
    }
    %c0 = arith.constant 0 : index
    %c0_1 = arith.constant 0 : index
    %c0_2 = arith.constant 0 : index
    %3 = vector.load %arg3[%c0, %c0_1, %c0_2] : memref<1x8x256xbf16, #tpu.memory_space<vmem>>, vector<1x8x256xbf16>
    %4 = vector.shape_cast %3 : vector<1x8x256xbf16> to vector<8x256xbf16>
    %c0_3 = arith.constant 0 : index
    %c0_4 = arith.constant 0 : index
    %5 = vector.load %arg5[%c0_3, %c0_4] : memref<16x8xbf16, #tpu.memory_space<vmem>>, vector<16x8xbf16>
    %cst = arith.constant dense<0.000000e+00> : vector<16x256xf32>
    %6 = tpu.matmul %5, %4, %cst {dimension_numbers = #tpu.dot_dimension_numbers<[1], [0], [0], [1], [0, 0, 1, 1], [], []>} : vector<16x8xbf16>, vector<8x256xbf16>, vector<16x256xf32> -> vector<16x256xf32>
    %c0_5 = arith.constant 0 : index
    %c0_6 = arith.constant 0 : index
    %7 = vector.load %arg6[%c0_5, %c0_6] : memref<16x1xf32, #tpu.memory_space<vmem>>, vector<16x1xf32>
    %8 = vector.broadcast %7 : vector<16x1xf32> to vector<16x256xf32>
    %9 = arith.addf %6, %8 : vector<16x256xf32>
    %cst_7 = arith.constant 0.000000e+00 : f32
    %10 = vector.broadcast %cst_7 : f32 to vector<16x256xf32>
    %11 = arith.maximumf %9, %10 : vector<16x256xf32>
    %12 = arith.truncf %11 : vector<16x256xf32> to vector<16x256xbf16>
    %c0_8 = arith.constant 0 : index
    %c0_9 = arith.constant 0 : index
    %13 = vector.load %arg7[%c0_8, %c0_9] : memref<16x16xbf16, #tpu.memory_space<vmem>>, vector<16x16xbf16>
    %cst_10 = arith.constant dense<0.000000e+00> : vector<16x256xf32>
    %14 = tpu.matmul %13, %12, %cst_10 {dimension_numbers = #tpu.dot_dimension_numbers<[1], [0], [0], [1], [0, 0, 1, 1], [], []>} : vector<16x16xbf16>, vector<16x256xbf16>, vector<16x256xf32> -> vector<16x256xf32>
    %c0_11 = arith.constant 0 : index
    %c0_12 = arith.constant 0 : index
    %15 = vector.load %arg8[%c0_11, %c0_12] : memref<16x1xf32, #tpu.memory_space<vmem>>, vector<16x1xf32>
    %16 = vector.broadcast %15 : vector<16x1xf32> to vector<16x256xf32>
    %17 = arith.addf %14, %16 : vector<16x256xf32>
    %cst_13 = arith.constant 0.000000e+00 : f32
    %18 = vector.broadcast %cst_13 : f32 to vector<16x256xf32>
    %19 = arith.maximumf %17, %18 : vector<16x256xf32>
    %20 = arith.truncf %19 : vector<16x256xf32> to vector<16x256xbf16>
    %c0_14 = arith.constant 0 : index
    %c0_15 = arith.constant 0 : index
    %21 = vector.load %arg18[%c0_14, %c0_15] : memref<8x16xbf16, #tpu.memory_space<vmem>>, vector<8x16xbf16>
    %cst_16 = arith.constant dense<0.000000e+00> : vector<8x256xf32>
    %22 = tpu.matmul %21, %20, %cst_16 {dimension_numbers = #tpu.dot_dimension_numbers<[1], [0], [0], [1], [0, 0, 1, 1], [], []>} : vector<8x16xbf16>, vector<16x256xbf16>, vector<8x256xf32> -> vector<8x256xf32>
    %cst_17 = arith.constant dense<0xFF800000> : vector<256xf32>
    %23 = vector.multi_reduction <maximumf>, %22, %cst_17 [0] : vector<8x256xf32> to vector<256xf32>
    %24 = vector.shape_cast %23 : vector<256xf32> to vector<1x256xf32>
    %25 = vector.broadcast %24 : vector<1x256xf32> to vector<8x256xf32>
    %26 = arith.subf %22, %25 : vector<8x256xf32>
    %27 = math.exp %26 : vector<8x256xf32>
    %cst_18 = arith.constant dense<0.000000e+00> : vector<256xf32>
    %28 = vector.multi_reduction <add>, %27, %cst_18 [0] : vector<8x256xf32> to vector<256xf32>
    %29 = vector.shape_cast %28 : vector<256xf32> to vector<1x256xf32>
    %30 = tpu.reciprocal %29 {approx = true} : vector<1x256xf32> -> vector<1x256xf32>
    %31 = vector.broadcast %30 : vector<1x256xf32> to vector<8x256xf32>
    %32 = arith.mulf %27, %31 : vector<8x256xf32>
    %c0_19 = arith.constant 0 : index
    %c0_20 = arith.constant 0 : index
    %33 = vector.load %arg19[%c0_19, %c0_20] : memref<16x8xbf16, #tpu.memory_space<vmem>>, vector<16x8xbf16>
    %34 = arith.truncf %32 : vector<8x256xf32> to vector<8x256xbf16>
    %cst_21 = arith.constant dense<0.000000e+00> : vector<16x256xf32>
    %35 = tpu.matmul %33, %34, %cst_21 {dimension_numbers = #tpu.dot_dimension_numbers<[1], [0], [0], [1], [0, 0, 1, 1], [], []>} : vector<16x8xbf16>, vector<8x256xbf16>, vector<16x256xf32> -> vector<16x256xf32>
    %c0_22 = arith.constant 0 : index
    %c0_23 = arith.constant 0 : index
    %36 = vector.load %arg15[%c0_22, %c0_23] : memref<8x16xbf16, #tpu.memory_space<vmem>>, vector<8x16xbf16>
    %37 = arith.truncf %35 : vector<16x256xf32> to vector<16x256xbf16>
    %cst_24 = arith.constant dense<0.000000e+00> : vector<8x256xf32>
    %38 = tpu.matmul %36, %37, %cst_24 {dimension_numbers = #tpu.dot_dimension_numbers<[1], [0], [0], [1], [0, 0, 1, 1], [], []>} : vector<8x16xbf16>, vector<16x256xbf16>, vector<8x256xf32> -> vector<8x256xf32>
    %c0_25 = arith.constant 0 : index
    %c0_26 = arith.constant 0 : index
    %39 = vector.load %arg16[%c0_25, %c0_26] : memref<8x1xf32, #tpu.memory_space<vmem>>, vector<8x1xf32>
    %40 = vector.broadcast %39 : vector<8x1xf32> to vector<8x256xf32>
    %41 = arith.addf %38, %40 : vector<8x256xf32>
    %cst_27 = arith.constant 0.000000e+00 : f32
    %42 = vector.broadcast %cst_27 : f32 to vector<8x256xf32>
    %43 = arith.maximumf %41, %42 : vector<8x256xf32>
    %44 = arith.truncf %43 : vector<8x256xf32> to vector<8x256xbf16>
    %c0_28 = arith.constant 0 : index
    %c0_29 = arith.constant 0 : index
    %c0_30 = arith.constant 0 : index
    %45 = vector.load %arg17[%c0_28, %c0_29, %c0_30] : memref<1x8x256xbf16, #tpu.memory_space<vmem>>, vector<1x8x256xbf16>
    %46 = vector.shape_cast %45 : vector<1x8x256xbf16> to vector<8x256xbf16>
    %47 = vector.shape_cast %44 : vector<8x256xbf16> to vector<1x8x256xbf16>
    tpu.vector_store %arg17[%c0_28, %c0_29, %c0_30], %47 {strides = array<i32>} : memref<1x8x256xbf16, #tpu.memory_space<vmem>>, vector<1x8x256xbf16>,
    return
  }
  func.func @transform_0(%arg0: i32, %arg1: i32, %arg2: i32) -> (i32, i32, i32) {
    %c1_i32 = arith.constant 1 : i32
    %0 = arith.muli %arg1, %c1_i32 : i32
    %1 = arith.addi %0, %arg2 : i32
    %c0_i32 = arith.constant 0 : i32
    %c0_i32_0 = arith.constant 0 : i32
    return %arg0, %c0_i32, %1 : i32, i32, i32
  }
  func.func @transform_1(%arg0: i32, %arg1: i32, %arg2: i32) -> (i32, i32, i32) {
    %c0_i32 = arith.constant 0 : i32
    %c0_i32_0 = arith.constant 0 : i32
    %c0_i32_1 = arith.constant 0 : i32
    return %arg0, %c0_i32, %c0_i32_0 : i32, i32, i32
  }
  func.func @transform_2(%arg0: i32, %arg1: i32, %arg2: i32) -> (i32, i32) {
    %c0_i32 = arith.constant 0 : i32
    %c0_i32_0 = arith.constant 0 : i32
    %c0_i32_1 = arith.constant 0 : i32
    return %c0_i32, %c0_i32_0 : i32, i32
  }
  func.func @transform_3(%arg0: i32, %arg1: i32, %arg2: i32) -> (i32, i32) {
    %c0_i32 = arith.constant 0 : i32
    %c0_i32_0 = arith.constant 0 : i32
    %c0_i32_1 = arith.constant 0 : i32
    return %c0_i32, %c0_i32_0 : i32, i32
  }
  func.func @transform_4(%arg0: i32, %arg1: i32, %arg2: i32) -> (i32, i32) {
    %c0_i32 = arith.constant 0 : i32
    %c0_i32_0 = arith.constant 0 : i32
    %c0_i32_1 = arith.constant 0 : i32
    return %c0_i32, %c0_i32_0 : i32, i32
  }
  func.func @transform_5(%arg0: i32, %arg1: i32, %arg2: i32) -> (i32, i32) {
    %c0_i32 = arith.constant 0 : i32
    %c0_i32_0 = arith.constant 0 : i32
    %c0_i32_1 = arith.constant 0 : i32
    return %c0_i32, %c0_i32_0 : i32, i32
  }
  func.func @transform_6(%arg0: i32, %arg1: i32, %arg2: i32) -> (i32, i32) {
    %c0_i32 = arith.constant 0 : i32
    %c0_i32_0 = arith.constant 0 : i32
    %c0_i32_1 = arith.constant 0 : i32
    return %c0_i32, %c0_i32_0 : i32, i32
  }
  func.func @transform_7(%arg0: i32, %arg1: i32, %arg2: i32) -> (i32, i32) {
    %c0_i32 = arith.constant 0 : i32
    %c0_i32_0 = arith.constant 0 : i32
    %c0_i32_1 = arith.constant 0 : i32
    return %c0_i32, %c0_i32_0 : i32, i32
  }
  func.func @transform_8(%arg0: i32, %arg1: i32, %arg2: i32) -> (i32, i32) {
    %c0_i32 = arith.constant 0 : i32
    %c0_i32_0 = arith.constant 0 : i32
    %c0_i32_1 = arith.constant 0 : i32
    return %c0_i32, %c0_i32_0 : i32, i32
  }
  func.func @transform_9(%arg0: i32, %arg1: i32, %arg2: i32) -> (i32, i32) {
    %c0_i32 = arith.constant 0 : i32
    %c0_i32_0 = arith.constant 0 : i32
    %c0_i32_1 = arith.constant 0 : i32
    return %c0_i32, %c0_i32_0 : i32, i32
  }
  func.func @transform_10(%arg0: i32, %arg1: i32, %arg2: i32) -> (i32, i32) {
    %c0_i32 = arith.constant 0 : i32
    %c0_i32_0 = arith.constant 0 : i32
    %c0_i32_1 = arith.constant 0 : i32
    return %c0_i32, %c0_i32_0 : i32, i32
  }
  func.func @transform_11(%arg0: i32, %arg1: i32, %arg2: i32) -> (i32, i32) {
    %c0_i32 = arith.constant 0 : i32
    %c0_i32_0 = arith.constant 0 : i32
    %c0_i32_1 = arith.constant 0 : i32
    return %c0_i32, %c0_i32_0 : i32, i32
  }
  func.func @transform_12(%arg0: i32, %arg1: i32, %arg2: i32) -> (i32, i32) {
    %c0_i32 = arith.constant 0 : i32
    %c0_i32_0 = arith.constant 0 : i32
    %c0_i32_1 = arith.constant 0 : i32
    return %c0_i32, %c0_i32_0 : i32, i32
  }
  func.func @transform_13(%arg0: i32, %arg1: i32, %arg2: i32) -> (i32, i32) {
    %c0_i32 = arith.constant 0 : i32
    %c0_i32_0 = arith.constant 0 : i32
    %c0_i32_1 = arith.constant 0 : i32
    return %c0_i32, %c0_i32_0 : i32, i32
  }
  func.func @transform_14(%arg0: i32, %arg1: i32, %arg2: i32) -> (i32, i32, i32) {
    %c1_i32 = arith.constant 1 : i32
    %0 = arith.muli %arg1, %c1_i32 : i32
    %1 = arith.addi %0, %arg2 : i32
    %c0_i32 = arith.constant 0 : i32
    %c0_i32_0 = arith.constant 0 : i32
    return %arg0, %c0_i32, %1 : i32, i32, i32
  }
}

module attributes {stable_mosaic.version = 11 : i64} {
  func.func @_oab_kernel(%arg0: i32, %arg1: i32, %arg2: i32, %arg3: memref<1x8x256xbf16, #tpu.memory_space<vmem>>, %arg4: memref<1x8x8xbf16, #tpu.memory_space<vmem>>, %arg5: memref<16x8xbf16, #tpu.memory_space<vmem>>, %arg6: memref<16x1xf32, #tpu.memory_space<vmem>>, %arg7: memref<16x16xbf16, #tpu.memory_space<vmem>>, %arg8: memref<16x1xf32, #tpu.memory_space<vmem>>, %arg9: memref<16x8xbf16, #tpu.memory_space<vmem>>, %arg10: memref<16x1xf32, #tpu.memory_space<vmem>>, %arg11: memref<16x16xbf16, #tpu.memory_space<vmem>>, %arg12: memref<16x1xf32, #tpu.memory_space<vmem>>, %arg13: memref<16x8xbf16, #tpu.memory_space<vmem>>, %arg14: memref<16x1xf32, #tpu.memory_space<vmem>>, %arg15: memref<8x16xbf16, #tpu.memory_space<vmem>>, %arg16: memref<8x1xf32, #tpu.memory_space<vmem>>, %arg17: memref<1x8x256xbf16, #tpu.memory_space<vmem>>, %arg18: memref<8x16xbf16, #tpu.memory_space<vmem>>, %arg19: memref<16x8xbf16, #tpu.memory_space<vmem>>) attributes {dimension_semantics = [#tpu.dimension_semantics<parallel>, #tpu.dimension_semantics<parallel>, #tpu.dimension_semantics<arbitrary>], iteration_bounds = array<i64: 2, 1, 1>, scalar_prefetch = 0 : i64, scratch_operands = 2 : i64, tpu.core_type = #tpu.core_type<tc>, window_params = [{transform_indices = @transform_0, window_bounds = array<i64: 1, 8, 256>}, {transform_indices = @transform_1, window_bounds = array<i64: 1, 8, 8>}, {pipeline_mode = #tpu.pipeline_mode<synchronous>, transform_indices = @transform_2, window_bounds = array<i64: 16, 8>}, {pipeline_mode = #tpu.pipeline_mode<synchronous>, transform_indices = @transform_3, window_bounds = array<i64: 16, 1>}, {pipeline_mode = #tpu.pipeline_mode<synchronous>, transform_indices = @transform_4, window_bounds = array<i64: 16, 16>}, {pipeline_mode = #tpu.pipeline_mode<synchronous>, transform_indices = @transform_5, window_bounds = array<i64: 16, 1>}, {pipeline_mode = #tpu.pipeline_mode<synchronous>, transform_indices = @transform_6, window_bounds = array<i64: 16, 8>}, {pipeline_mode = #tpu.pipeline_mode<synchronous>, transform_indices = @transform_7, window_bounds = array<i64: 16, 1>}, {pipeline_mode = #tpu.pipeline_mode<synchronous>, transform_indices = @transform_8, window_bounds = array<i64: 16, 16>}, {pipeline_mode = #tpu.pipeline_mode<synchronous>, transform_indices = @transform_9, window_bounds = array<i64: 16, 1>}, {pipeline_mode = #tpu.pipeline_mode<synchronous>, transform_indices = @transform_10, window_bounds = array<i64: 16, 8>}, {pipeline_mode = #tpu.pipeline_mode<synchronous>, transform_indices = @transform_11, window_bounds = array<i64: 16, 1>}, {pipeline_mode = #tpu.pipeline_mode<synchronous>, transform_indices = @transform_12, window_bounds = array<i64: 8, 16>}, {pipeline_mode = #tpu.pipeline_mode<synchronous>, transform_indices = @transform_13, window_bounds = array<i64: 8, 1>}, {transform_indices = @transform_14, window_bounds = array<i64: 1, 8, 256>}]} {
    %c0_i32 = arith.constant 0 : i32
    %0 = arith.cmpi eq, %arg2, %c0_i32 : i32
    %1 = arith.extui %0 : i1 to i32
    %c0_i32_0 = arith.constant 0 : i32
    %2 = arith.cmpi ne, %1, %c0_i32_0 : i32
    scf.if %2 {
      %c0_31 = arith.constant 0 : index
      %c0_32 = arith.constant 0 : index
      %c0_33 = arith.constant 0 : index
      %48 = vector.load %arg4[%c0_31, %c0_32, %c0_33] : memref<1x8x8xbf16, #tpu.memory_space<vmem>>, vector<1x8x8xbf16>
      %49 = vector.shape_cast %48 : vector<1x8x8xbf16> to vector<8x8xbf16>
      %c0_34 = arith.constant 0 : index
      %c0_35 = arith.constant 0 : index
      %50 = vector.load %arg9[%c0_34, %c0_35] : memref<16x8xbf16, #tpu.memory_space<vmem>>, vector<16x8xbf16>
      %cst_36 = arith.constant dense<0.000000e+00> : vector<16x8xf32>
      %51 = tpu.matmul %50, %49, %cst_36 {dimension_numbers = #tpu.dot_dimension_numbers<[1], [0], [0], [1], [0, 0, 1, 1], [], []>} : vector<16x8xbf16>, vector<8x8xbf16>, vector<16x8xf32> -> vector<16x8xf32>
      %c0_37 = arith.constant 0 : index
      %c0_38 = arith.constant 0 : index
      %52 = vector.load %arg10[%c0_37, %c0_38] : memref<16x1xf32, #tpu.memory_space<vmem>>, vector<16x1xf32>
      %53 = vector.broadcast %52 : vector<16x1xf32> to vector<16x8xf32>
      %54 = arith.addf %51, %53 : vector<16x8xf32>
      %cst_39 = arith.constant 0.000000e+00 : f32
      %55 = vector.broadcast %cst_39 : f32 to vector<16x8xf32>
      %56 = arith.maximumf %54, %55 : vector<16x8xf32>
      %57 = arith.truncf %56 : vector<16x8xf32> to vector<16x8xbf16>
      %c0_40 = arith.constant 0 : index
      %c0_41 = arith.constant 0 : index
      %58 = vector.load %arg11[%c0_40, %c0_41] : memref<16x16xbf16, #tpu.memory_space<vmem>>, vector<16x16xbf16>
      %cst_42 = arith.constant dense<0.000000e+00> : vector<16x8xf32>
      %59 = tpu.matmul %58, %57, %cst_42 {dimension_numbers = #tpu.dot_dimension_numbers<[1], [0], [0], [1], [0, 0, 1, 1], [], []>} : vector<16x16xbf16>, vector<16x8xbf16>, vector<16x8xf32> -> vector<16x8xf32>
      %c0_43 = arith.constant 0 : index
      %c0_44 = arith.constant 0 : index
      %60 = vector.load %arg12[%c0_43, %c0_44] : memref<16x1xf32, #tpu.memory_space<vmem>>, vector<16x1xf32>
      %61 = vector.broadcast %60 : vector<16x1xf32> to vector<16x8xf32>
      %62 = arith.addf %59, %61 : vector<16x8xf32>
      %cst_45 = arith.constant 0.000000e+00 : f32
      %63 = vector.broadcast %cst_45 : f32 to vector<16x8xf32>
      %64 = arith.maximumf %62, %63 : vector<16x8xf32>
      %65 = arith.truncf %64 : vector<16x8xf32> to vector<16x8xbf16>
      %66 = tpu.transpose %65, [1, 0] : vector<16x8xbf16> -> vector<8x16xbf16>
      %c0_46 = arith.constant 0 : index
      %c0_47 = arith.constant 0 : index
      %67 = vector.load %arg18[%c0_46, %c0_47] : memref<8x16xbf16, #tpu.memory_space<vmem>>, vector<8x16xbf16>
      tpu.vector_store %arg18[%c0_46, %c0_47], %66 {strides = array<i32>} : memref<8x16xbf16, #tpu.memory_space<vmem>>, vector<8x16xbf16>,
      %c0_48 = arith.constant 0 : index
      %c0_49 = arith.constant 0 : index
      %68 = vector.load %arg13[%c0_48, %c0_49] : memref<16x8xbf16, #tpu.memory_space<vmem>>, vector<16x8xbf16>
      %cst_50 = arith.constant dense<0.000000e+00> : vector<16x8xf32>
      %69 = tpu.matmul %68, %49, %cst_50 {dimension_numbers = #tpu.dot_dimension_numbers<[1], [0], [0], [1], [0, 0, 1, 1], [], []>} : vector<16x8xbf16>, vector<8x8xbf16>, vector<16x8xf32> -> vector<16x8xf32>
      %c0_51 = arith.constant 0 : index
      %c0_52 = arith.constant 0 : index
      %70 = vector.load %arg14[%c0_51, %c0_52] : memref<16x1xf32, #tpu.memory_space<vmem>>, vector<16x1xf32>
      %71 = vector.broadcast %70 : vector<16x1xf32> to vector<16x8xf32>
      %72 = arith.addf %69, %71 : vector<16x8xf32>
      %cst_53 = arith.constant 0.000000e+00 : f32
      %73 = vector.broadcast %cst_53 : f32 to vector<16x8xf32>
      %74 = arith.maximumf %72, %73 : vector<16x8xf32>
      %75 = arith.truncf %74 : vector<16x8xf32> to vector<16x8xbf16>
      %c0_54 = arith.constant 0 : index
      %c0_55 = arith.constant 0 : index
      %76 = vector.load %arg19[%c0_54, %c0_55] : memref<16x8xbf16, #tpu.memory_space<vmem>>, vector<16x8xbf16>
      tpu.vector_store %arg19[%c0_54, %c0_55], %75 {strides = array<i32>} : memref<16x8xbf16, #tpu.memory_space<vmem>>, vector<16x8xbf16>,
    } else {
    }
    %c0 = arith.constant 0 : index
    %c0_1 = arith.constant 0 : index
    %c0_2 = arith.constant 0 : index
    %3 = vector.load %arg3[%c0, %c0_1, %c0_2] : memref<1x8x256xbf16, #tpu.memory_space<vmem>>, vector<1x8x256xbf16>
    %4 = vector.shape_cast %3 : vector<1x8x256xbf16> to vector<8x256xbf16>
    %c0_3 = arith.constant 0 : index
    %c0_4 = arith.constant 0 : index
    %5 = vector.load %arg5[%c0_3, %c0_4] : memref<16x8xbf16, #tpu.memory_space<vmem>>, vector<16x8xbf16>
    %cst = arith.constant dense<0.000000e+00> : vector<16x256xf32>
    %6 = tpu.matmul %5, %4, %cst {dimension_numbers = #tpu.dot_dimension_numbers<[1], [0], [0], [1], [0, 0, 1, 1], [], []>} : vector<16x8xbf16>, vector<8x256xbf16>, vector<16x256xf32> -> vector<16x256xf32>
    %c0_5 = arith.constant 0 : index
    %c0_6 = arith.constant 0 : index
    %7 = vector.load %arg6[%c0_5, %c0_6] : memref<16x1xf32, #tpu.memory_space<vmem>>, vector<16x1xf32>
    %8 = vector.broadcast %7 : vector<16x1xf32> to vector<16x256xf32>
    %9 = arith.addf %6, %8 : vector<16x256xf32>
    %cst_7 = arith.constant 0.000000e+00 : f32
    %10 = vector.broadcast %cst_7 : f32 to vector<16x256xf32>
    %11 = arith.maximumf %9, %10 : vector<16x256xf32>
    %12 = arith.truncf %11 : vector<16x256xf32> to vector<16x256xbf16>
    %c0_8 = arith.constant 0 : index
    %c0_9 = arith.constant 0 : index
    %13 = vector.load %arg7[%c0_8, %c0_9] : memref<16x16xbf16, #tpu.memory_space<vmem>>, vector<16x16xbf16>
    %cst_10 = arith.constant dense<0.000000e+00> : vector<16x256xf32>
    %14 = tpu.matmul %13, %12, %cst_10 {dimension_numbers = #tpu.dot_dimension_numbers<[1], [0], [0], [1], [0, 0, 1, 1], [], []>} : vector<16x16xbf16>, vector<16x256xbf16>, vector<16x256xf32> -> vector<16x256xf32>
    %c0_11 = arith.constant 0 : index
    %c0_12 = arith.constant 0 : index
    %15 = vector.load %arg8[%c0_11, %c0_12] : memref<16x1xf32, #tpu.memory_space<vmem>>, vector<16x1xf32>
    %16 = vector.broadcast %15 : vector<16x1xf32> to vector<16x256xf32>
    %17 = arith.addf %14, %16 : vector<16x256xf32>
    %cst_13 = arith.constant 0.000000e+00 : f32
    %18 = vector.broadcast %cst_13 : f32 to vector<16x256xf32>
    %19 = arith.maximumf %17, %18 : vector<16x256xf32>
    %20 = arith.truncf %19 : vector<16x256xf32> to vector<16x256xbf16>
    %c0_14 = arith.constant 0 : index
    %c0_15 = arith.constant 0 : index
    %21 = vector.load %arg18[%c0_14, %c0_15] : memref<8x16xbf16, #tpu.memory_space<vmem>>, vector<8x16xbf16>
    %cst_16 = arith.constant dense<0.000000e+00> : vector<8x256xf32>
    %22 = tpu.matmul %21, %20, %cst_16 {dimension_numbers = #tpu.dot_dimension_numbers<[1], [0], [0], [1], [0, 0, 1, 1], [], []>} : vector<8x16xbf16>, vector<16x256xbf16>, vector<8x256xf32> -> vector<8x256xf32>
    %cst_17 = arith.constant dense<0xFF800000> : vector<256xf32>
    %23 = vector.multi_reduction <maximumf>, %22, %cst_17 [0] : vector<8x256xf32> to vector<256xf32>
    %24 = vector.shape_cast %23 : vector<256xf32> to vector<1x256xf32>
    %25 = vector.broadcast %24 : vector<1x256xf32> to vector<8x256xf32>
    %26 = arith.subf %22, %25 : vector<8x256xf32>
    %27 = math.exp %26 : vector<8x256xf32>
    %cst_18 = arith.constant dense<0.000000e+00> : vector<256xf32>
    %28 = vector.multi_reduction <add>, %27, %cst_18 [0] : vector<8x256xf32> to vector<256xf32>
    %29 = vector.shape_cast %28 : vector<256xf32> to vector<1x256xf32>
    %30 = tpu.reciprocal %29 {approx = true} : vector<1x256xf32> -> vector<1x256xf32>
    %31 = vector.broadcast %30 : vector<1x256xf32> to vector<8x256xf32>
    %32 = arith.mulf %27, %31 : vector<8x256xf32>
    %c0_19 = arith.constant 0 : index
    %c0_20 = arith.constant 0 : index
    %33 = vector.load %arg19[%c0_19, %c0_20] : memref<16x8xbf16, #tpu.memory_space<vmem>>, vector<16x8xbf16>
    %34 = arith.truncf %32 : vector<8x256xf32> to vector<8x256xbf16>
    %cst_21 = arith.constant dense<0.000000e+00> : vector<16x256xf32>
    %35 = tpu.matmul %33, %34, %cst_21 {dimension_numbers = #tpu.dot_dimension_numbers<[1], [0], [0], [1], [0, 0, 1, 1], [], []>} : vector<16x8xbf16>, vector<8x256xbf16>, vector<16x256xf32> -> vector<16x256xf32>
    %c0_22 = arith.constant 0 : index
    %c0_23 = arith.constant 0 : index
    %36 = vector.load %arg15[%c0_22, %c0_23] : memref<8x16xbf16, #tpu.memory_space<vmem>>, vector<8x16xbf16>
    %37 = arith.truncf %35 : vector<16x256xf32> to vector<16x256xbf16>
    %cst_24 = arith.constant dense<0.000000e+00> : vector<8x256xf32>
    %38 = tpu.matmul %36, %37, %cst_24 {dimension_numbers = #tpu.dot_dimension_numbers<[1], [0], [0], [1], [0, 0, 1, 1], [], []>} : vector<8x16xbf16>, vector<16x256xbf16>, vector<8x256xf32> -> vector<8x256xf32>
    %c0_25 = arith.constant 0 : index
    %c0_26 = arith.constant 0 : index
    %39 = vector.load %arg16[%c0_25, %c0_26] : memref<8x1xf32, #tpu.memory_space<vmem>>, vector<8x1xf32>
    %40 = vector.broadcast %39 : vector<8x1xf32> to vector<8x256xf32>
    %41 = arith.addf %38, %40 : vector<8x256xf32>
    %cst_27 = arith.constant 0.000000e+00 : f32
    %42 = vector.broadcast %cst_27 : f32 to vector<8x256xf32>
    %43 = arith.maximumf %41, %42 : vector<8x256xf32>
    %44 = arith.truncf %43 : vector<8x256xf32> to vector<8x256xbf16>
    %c0_28 = arith.constant 0 : index
    %c0_29 = arith.constant 0 : index
    %c0_30 = arith.constant 0 : index
    %45 = vector.load %arg17[%c0_28, %c0_29, %c0_30] : memref<1x8x256xbf16, #tpu.memory_space<vmem>>, vector<1x8x256xbf16>
    %46 = vector.shape_cast %45 : vector<1x8x256xbf16> to vector<8x256xbf16>
    %47 = vector.shape_cast %44 : vector<8x256xbf16> to vector<1x8x256xbf16>
    tpu.vector_store %arg17[%c0_28, %c0_29, %c0_30], %47 {strides = array<i32>} : memref<1x8x256xbf16, #tpu.memory_space<vmem>>, vector<1x8x256xbf16>,
    return
  }
  func.func @transform_0(%arg0: i32, %arg1: i32, %arg2: i32) -> (i32, i32, i32) {
    %c1_i32 = arith.constant 1 : i32
    %0 = arith.muli %arg1, %c1_i32 : i32
    %1 = arith.addi %0, %arg2 : i32
    %c0_i32 = arith.constant 0 : i32
    %c0_i32_0 = arith.constant 0 : i32
    return %arg0, %c0_i32, %1 : i32, i32, i32
  }
  func.func @transform_1(%arg0: i32, %arg1: i32, %arg2: i32) -> (i32, i32, i32) {
    %c0_i32 = arith.constant 0 : i32
    %c0_i32_0 = arith.constant 0 : i32
    %c0_i32_1 = arith.constant 0 : i32
    return %arg0, %c0_i32, %c0_i32_0 : i32, i32, i32
  }
  func.func @transform_2(%arg0: i32, %arg1: i32, %arg2: i32) -> (i32, i32) {
    %c0_i32 = arith.constant 0 : i32
    %c0_i32_0 = arith.constant 0 : i32
    %c0_i32_1 = arith.constant 0 : i32
    return %c0_i32, %c0_i32_0 : i32, i32
  }
  func.func @transform_3(%arg0: i32, %arg1: i32, %arg2: i32) -> (i32, i32) {
    %c0_i32 = arith.constant 0 : i32
    %c0_i32_0 = arith.constant 0 : i32
    %c0_i32_1 = arith.constant 0 : i32
    return %c0_i32, %c0_i32_0 : i32, i32
  }
  func.func @transform_4(%arg0: i32, %arg1: i32, %arg2: i32) -> (i32, i32) {
    %c0_i32 = arith.constant 0 : i32
    %c0_i32_0 = arith.constant 0 : i32
    %c0_i32_1 = arith.constant 0 : i32
    return %c0_i32, %c0_i32_0 : i32, i32
  }
  func.func @transform_5(%arg0: i32, %arg1: i32, %arg2: i32) -> (i32, i32) {
    %c0_i32 = arith.constant 0 : i32
    %c0_i32_0 = arith.constant 0 : i32
    %c0_i32_1 = arith.constant 0 : i32
    return %c0_i32, %c0_i32_0 : i32, i32
  }
  func.func @transform_6(%arg0: i32, %arg1: i32, %arg2: i32) -> (i32, i32) {
    %c0_i32 = arith.constant 0 : i32
    %c0_i32_0 = arith.constant 0 : i32
    %c0_i32_1 = arith.constant 0 : i32
    return %c0_i32, %c0_i32_0 : i32, i32
  }
  func.func @transform_7(%arg0: i32, %arg1: i32, %arg2: i32) -> (i32, i32) {
    %c0_i32 = arith.constant 0 : i32
    %c0_i32_0 = arith.constant 0 : i32
    %c0_i32_1 = arith.constant 0 : i32
    return %c0_i32, %c0_i32_0 : i32, i32
  }
  func.func @transform_8(%arg0: i32, %arg1: i32, %arg2: i32) -> (i32, i32) {
    %c0_i32 = arith.constant 0 : i32
    %c0_i32_0 = arith.constant 0 : i32
    %c0_i32_1 = arith.constant 0 : i32
    return %c0_i32, %c0_i32_0 : i32, i32
  }
  func.func @transform_9(%arg0: i32, %arg1: i32, %arg2: i32) -> (i32, i32) {
    %c0_i32 = arith.constant 0 : i32
    %c0_i32_0 = arith.constant 0 : i32
    %c0_i32_1 = arith.constant 0 : i32
    return %c0_i32, %c0_i32_0 : i32, i32
  }
  func.func @transform_10(%arg0: i32, %arg1: i32, %arg2: i32) -> (i32, i32) {
    %c0_i32 = arith.constant 0 : i32
    %c0_i32_0 = arith.constant 0 : i32
    %c0_i32_1 = arith.constant 0 : i32
    return %c0_i32, %c0_i32_0 : i32, i32
  }
  func.func @transform_11(%arg0: i32, %arg1: i32, %arg2: i32) -> (i32, i32) {
    %c0_i32 = arith.constant 0 : i32
    %c0_i32_0 = arith.constant 0 : i32
    %c0_i32_1 = arith.constant 0 : i32
    return %c0_i32, %c0_i32_0 : i32, i32
  }
  func.func @transform_12(%arg0: i32, %arg1: i32, %arg2: i32) -> (i32, i32) {
    %c0_i32 = arith.constant 0 : i32
    %c0_i32_0 = arith.constant 0 : i32
    %c0_i32_1 = arith.constant 0 : i32
    return %c0_i32, %c0_i32_0 : i32, i32
  }
  func.func @transform_13(%arg0: i32, %arg1: i32, %arg2: i32) -> (i32, i32) {
    %c0_i32 = arith.constant 0 : i32
    %c0_i32_0 = arith.constant 0 : i32
    %c0_i32_1 = arith.constant 0 : i32
    return %c0_i32, %c0_i32_0 : i32, i32
  }
  func.func @transform_14(%arg0: i32, %arg1: i32, %arg2: i32) -> (i32, i32, i32) {
    %c1_i32 = arith.constant 1 : i32
    %0 = arith.muli %arg1, %c1_i32 : i32
    %1 = arith.addi %0, %arg2 : i32
    %c0_i32 = arith.constant 0 : i32
    %c0_i32_0 = arith.constant 0 : i32
    return %arg0, %c0_i32, %1 : i32, i32, i32
  }
}

</mosaic_0001>

<bundles_post_ra>
// kernel: tpu_custom_call.1
= control target key start
LH: loop header
LB: loop body
LE: loop exit
PB: predicated region body
PF: predicated region fallthrough
CT: control target
= control target key end

     0   :  { %19 = vsyncpa [#allocation5], 0  ;;  %s1534_s0 = inlined_call_operand.vmem [shape: bf16[2,8,256], index: 0, kind: input, shape index: {}]   ;;  %s1535_s1 = inlined_call_operand.vmem [shape: bf16[2,8,8], index: 1, kind: input, shape index: {}]   ;;  %s1536_s2 = inlined_call_operand.vmem [shape: bf16[16,8], index: 2, kind: input, shape index: {}]   ;;  %s1537_s3 = inlined_call_operand.vmem [shape: f32[16,1], index: 3, kind: input, shape index: {}]   ;;  %s1538_s4 = inlined_call_operand.vmem [shape: bf16[16,16], index: 4, kind: input, shape index: {}]   ;;  %s1539_s5 = inlined_call_operand.vmem [shape: f32[16,1], index: 5, kind: input, shape index: {}]   ;;  %s1540_s6 = inlined_call_operand.vmem [shape: bf16[16,8], index: 6, kind: input, shape index: {}]   ;;  %s1541_s7 = inlined_call_operand.vmem [shape: f32[16,1], index: 7, kind: input, shape index: {}]   ;;  %s1542_s8 = inlined_call_operand.vmem [shape: bf16[16,16], index: 8, kind: input, shape index: {}]   ;;  %s1543_s9 = inlined_call_operand.vmem [shape: f32[16,1], index: 9, kind: input, shape index: {}]   ;;  %s1544_s10 = inlined_call_operand.vmem [shape: bf16[16,8], index: 10, kind: input, shape index: {}]   ;;  %s1545_s11 = inlined_call_operand.vmem [shape: f32[16,1], index: 11, kind: input, shape index: {}]   ;;  %s1546_s12 = inlined_call_operand.vmem [shape: bf16[8,16], index: 12, kind: input, shape index: {}]   ;;  %s1547_s13 = inlined_call_operand.vmem [shape: f32[8,1], index: 13, kind: input, shape index: {}]   ;;  %s1548_s14 = inlined_call_operand.hbm [shape: bf16[2,8,256], index: 14, kind: output, shape index: {}]  }
   0x1   :  { %21 = vsyncpa [#allocation5 + $0x1], 0  ;;  %s1355_s29 = smov 0   ;;  %s1357_s30 = smov 0  }
   0x2   :  { %s1359_s15 = smov 0   ;;  %s1361_s16 = smov 0  }
   0x3   :  { %s1363_s17 = smov 0   ;;  %s1365_s18 = smov 0  }
   0x4 LB: > { %1558 = sst [smem:[#allocation7_spill]] %s1257_s29  ;;  %s1073_s19 = sadd.s32 4294967295, %s1277_s18   ;;  %s1277_s18 = sphi %s1365_s18, %s27_s18   ;;  %s1273_s17 = sphi %s1363_s17, %s1575_s17   ;;  %s1269_s16 = sphi %s1361_s16, %s1574_s16   ;;  %s1265_s15 = sphi %s1359_s15, %s1573_s15   ;;  %s1261_s30 = sphi %s1357_s30, %s1577_s30   ;;  %s1257_s29 = sphi %s1355_s29, %s1576_s29  }
   0x5   : > { %1559 = sst [smem:[#allocation8_spill]] %s1265_s15  ;;  %s1074_s20 = sadd.s32 4294967294, %s1277_s18  }
   0x6   : > { %1560 = sst [smem:[#allocation9_spill]] %s1273_s17  ;;  %s46_s21 = sadd.s32 1, %s1273_s17 }
   0x7   : > { %1561 = sst [smem:[#allocation10_spill]] %s1277_s18  ;;  %s365_s22 = sadd.s32 1, %s1265_s15 }
   0x8   : > { %p48_p0 = scmp.ge.s32.totalorder %s46_s21, 2  ;;  %p375_p1 = scmp.ne.s32.totalorder %s1265_s15, %s1261_s30 }
   0x9   : > { %p376_p2 = scmp.eq.s32.totalorder %s1073_s19, 1  ;;  %p381_p3 = scmp.ne.s32.totalorder %s1261_s30, %s1257_s29 }
   0xa   : > { %s1579_s21 = smov (%p48_p0, %s46_s21), 0  ;;  %p382_p5 = scmp.eq.s32.totalorder %s1074_s20, 1 }
   0xb   : > { %1562 = sst [smem:[#allocation11_spill]] %s1579_s21  ;;  %p1395_p4 = por %p376_p2, %p375_p1 }
   0xc   : > { %s360_s24 = ssub.s32 %s1273_s17, %s1579_s21  ;;  %p1077_p6 = scmp.ge.s32.totalorder %s1277_s18, 1 }
   0xd   : > { %s1563_s23 = scalar_select %p1395_p4, 1, 0 }
   0xe   : > { %p363_p7 = scmp.eq.s32.totalorder %s360_s24, 0  ;;  %p1402_p8 = por %p382_p5, %p381_p3 }
   0xf   : > { %1564 = sst [smem:[#allocation12_spill]] %s1563_s23  ;;  %p458_p9 = scmp.lt.s32.totalorder %s1277_s18, 3 }
  0x10   : > { %s1565_s25 = scalar_select %p1402_p8, 1, 0 }
  0x11   : > { %s1408_s26 = scalar_select %p363_p7, %s1265_s15, %s365_s22  }
  0x12   : > { %1566 = sst [smem:[#allocation13_spill]] %s1565_s25  ;;  %p459_p10 = pnand %p1077_p6, %p458_p9 }
  0x13   : > { %1567 = sst [smem:[#allocation14_spill]] %s1408_s26  ;;  %p515_p11 = scmp.lt.s32.totalorder (!%p459_p10), %s1269_s16, 1 }
  0x14   : > { %462 = sbr.rel (%p459_p10) target bundleno = 950 (0x3b6), region = 76  ;;  %s1131_s20 = sshll.u32 (!%p459_p10), %s1269_s16, 3 }
  0x15   : > { %s976_s15 = scalar_lea.hbm (!%p459_p10), %s1548_s14, %s1131_s20 }
  0x16   : > { %s980_s23 = sshll.u32 (!%p459_p10), %s976_s15, 4  ;;  %s981_s23 = int_to_ptr.hbm [resolvable:$true] %s980_s23 }
  0x19   : > { %v539_v0 = vld [vmem:[%s1541_s7] sm:$0xff]  ;;  %v1279_v1 = vmov 0   ;;  %s516_s24 = scalar_select %p515_p11, %s1269_s16, 1  ;;  %vm560_vm0 = vcmask 1043456   ;;  %v540_v4 = vld [vmem:[%s1541_s7 + $0x8] sm:$0xff]  ;;  %vm556_vm1 = vcmask 64512  }
  0x1a   : > { %1188 = vset.pattern.permute.xlu0 %v1279_v1  ;;  %1189 = vset.pattern.permute.xlu1 %v1279_v1  ;;  %v685_v2 = vld [vmem:[%s1537_s3] sm:$0xff]  ;;  %v686_v10 = vld [vmem:[%s1537_s3 + $0x8] sm:$0xff]  ;;  %vm679_vm2 = vcmask 60416   ;;  %vm600_vm3 = vcmask 130048   ;;  %vm637_vm4 = vcmask 125952  }
  0x1b   : > { %543 = vperm.xlu0 %1188, %v539_v0   ;;  %689 = vperm.xlu1 %1189, %v685_v2   ;;  %s1081_s22 = sshll.u32 %s516_s24, 2  ;;  %s1124_s21 = sshll.u32 %s516_s24, 3  ;;  %v1125_v7 = vld [vmem:[%s1540_s6] sm:$0xff]  ;;  %v755_v18 = vld [vmem:[%s1539_s5 + $0x8] sm:$0xff] }
  0x1c   : > { %1190 = vset.pattern.permute.xlu2 %v1279_v1  ;;  %s528_s28 = scalar_lea.vmem %s1535_s1, %s1081_s22  ;;  %s522_s25 = scalar_lea.vmem %s1534_s0, %s1124_s21  ;;  %v1127_v8 = vld [vmem:[%s1544_s10] sm:$0xff]  ;;  %v642_v20 = vld [vmem:[%s1545_s11 + $0x8] sm:$0xff] }
  0x1d   : > { %v536_v3 = vld [vmem:[%s528_s28] sm:$0xf]  ;;  %v584_v35 = vld [vmem:[%s1543_s9 + $0x8] sm:$0xff]  ;;  %s510_s28 = sand.u32 1, %s1261_s30  }
  0x1e   : > { %v682_v5 = vld [vmem:[%s522_s25] sm:$0xff]  ;;  %v562_v6 = vsel %vm560_vm0, %v536_v3, 0  ;;  %s1078_s19 = sshll.u32 %s510_s28, 3  ;;  %s962_s16 = scalar_lea.sflag [#allocation5], %s510_s28 }
  0x1f   : > { %v703_v9 = vunpack.c.l.b16 %v682_v5  ;;  %v704_v11 = vunpack.c.h.b16 %v682_v5  ;;  %571 = vmatpush.bf16.msra.mxu0 %v562_v6  ;;  %668 = vmatpush.bf16.msra.mxu2 %v562_v6  ;;  %v1128_v15 = vld [vmem:[%s1536_s2] sm:$0xff]  ;;  %s512_s18 = scalar_lea.vmem [#allocation4], %s1078_s19  ;;  %s1213_s25 = sshra.s32 %s981_s23, 4  ;;  %s1214_s25 = int_to_ptr.hbm [resolvable:$true] %s1213_s25 }
  0x20   : > { %v754_v17 = vld [vmem:[%s1539_s5] sm:$0xff]  ;;  %s978_s21 = sshll.u32 %s512_s18, 4  ;;  %s1215_s26 = scalar_lea.hbm %s1214_s25, 8  ;;  %s979_s21 = int_to_ptr.vmem [resolvable:$true] %s978_s21 }
  0x21   : > { %v705_v12 = vpack.c.b16 %v703_v9, %v703_v9  ;;  %v706_v13 = vpack.c.b16 %v704_v11, %v704_v11  ;;  %v641_v19 = vld [vmem:[%s1545_s11] sm:$0xff]  ;;  %p1216_p12 = scmp.ne.s32.totalorder %s1214_s25, %s1215_s26  ;;  %s1219_s19 = scalar_lea.hbm %s1548_s14, 16 }
  0x22   : > { %1086 = vmatmul.msk.bf16.vlgmr.msra.gmra.mxu0 %vm556_vm1, %v1125_v7  ;;  %1096 = vmatmul.msk.bf16.vlgmr.msra.gmra.mxu2 %vm556_vm1, %v1127_v8  ;;  %v922_v21 = vld [vmem:[%s1547_s13] sm:$0xff]  ;;  %p1220_p1 = scmp.lt.s32.totalorder %s1214_s25, %s1548_s14  ;;  %p1221_p2 = scmp.lt.s32.totalorder %s1219_s19, %s1215_s26 }
  0x23   : > { %548 = vperm.xlu0 %1188, %v540_v4   ;;  %694 = vperm.xlu1 %1189, %v686_v10   ;;  %v713_v14 = vsel %vm560_vm0, %v705_v12, 0  ;;  %v716_v16 = vsel %vm560_vm0, %v706_v13, 0  ;;  %v583_v29 = vld [vmem:[%s1543_s9] sm:$0xff]  ;;  %p1217_p13 = pnand %p1216_p12, %p1395_p4 }
  0x24   : > { %725 = vmatpush.bf16.msra.mxu3 %v713_v14  ;;  %739 = vmatpush.bf16.msrb.mxu0 %v716_v16  ;;  %v1126_v45 = vld [vmem:[%s1542_s8] sm:$0xff]  ;;  %p1222_p3 = por %p1221_p2, %p1220_p1 }
  0x25   : > { %587 = vperm.xlu2 %1190, %v583_v29   ;;  %v1129_v62 = vld [vmem:[%s1538_s4] sm:$0xff]  ;;  %p1218_p0 = pneg %p1217_p13 }
  0x27   : > { %1101 = vmatmul.msk.bf16.vlgmr.msra.gmra.mxu3 %vm556_vm1, %v1128_v15  ;;  %p1223_p5 = pnand %p1222_p3, %p1218_p0 }
  0x2b   : > { %758 = vperm.xlu0 %1188, %v754_v17   ;;  %763 = vperm.xlu1 %1189, %v755_v18  }
  0x2d   : > { %592 = vperm.xlu2 %1190, %v584_v35  }
  0x32   : > { %1102 = vmatmul.msk.bf16.vlgmr.msrb.gmra.mxu0 %vm556_vm1, %v1128_v15 }
  0x33   : > { %645 = vperm.xlu0 %1188, %v641_v19   ;;  %650 = vperm.xlu1 %1189, %v642_v20  }
  0x3b   : > { %925 = vperm.xlu0 %1188, %v922_v21  }
  0x7f   : > { %v588_v63 = vpop.permute.xlu2 %587 }
  0x87   : > { %v593_v2 = vpop.permute.xlu2 %592 }
  0x8d   : > { %v544_v22 = vpop.permute.xlu0 %543  ;;  %v690_v23 = vpop.permute.xlu1 %689 }
  0x95   : > { %v549_v24 = vpop.permute.xlu0 %548  ;;  %v695_v25 = vpop.permute.xlu1 %694 }
  0x9d   : > { %v1461_v26 = vpop.permute.xlu0 %758  ;;  %v1463_v28 = vpop.permute.xlu1 %763 }
  0x9f   : > { %v573_v27 = vpop.f32.mrf.mxu0 }
  0xa0   : > { %v574_v32 = vadd.f32 %v573_v27, %v544_v22 }
  0xa2   : > { %v578_v39 = vmax.f32 %v574_v32, 0.0 }
  0xa5   : > { %v646_v30 = vpop.permute.xlu0 %645  ;;  %v670_v31 = vpop.f32.mrf.mxu2 }
  0xa6   : > { %v671_v33 = vadd.f32 %v670_v31, %v646_v30  ;;  %v651_v42 = vpop.permute.xlu1 %650 }
  0xa7   : > { %v575_v34 = vpop.f32.mrf.mxu0 }
  0xa8   : > { %v675_v36 = vmax.f32 %v671_v33, 0.0  ;;  %v576_v37 = vadd.f32 %v575_v34, %v549_v24 }
  0xaa   : > { %v727_v38 = vpop.f32.mrf.mxu3  ;;  %v677_v40 = vpack.c.bf16 %v675_v36, %v675_v36  ;;  %v579_v41 = vmax.f32 %v576_v37, 0.0 }
  0xab   : > { %v728_v47 = vadd.f32 %v727_v38, %v690_v23 }
  0xac   : > { %680 = vst.msk [vmem:[#allocation3] sm:$0xf] %vm679_vm2, %v677_v40  ;;  %v580_v43 = vpack.c.bf16 %v579_v41, %v578_v39 }
  0xad   : > { %v672_v44 = vpop.f32.mrf.mxu2  ;;  %v746_v52 = vmax.f32 %v728_v47, 0.0 }
  0xae   : > { %v673_v46 = vadd.f32 %v672_v44, %v651_v42  ;;  %611 = vmatpush.bf16.msra.mxu1 %v580_v43 }
  0xaf   : > { %v741_v48 = vpop.f32.mrf.mxu0 }
  0xb0   : > { %v676_v49 = vmax.f32 %v673_v46, 0.0  ;;  %v742_v54 = vadd.f32 %v741_v48, %v690_v23 }
  0xb1   : > { %1091 = vmatmul.msk.bf16.vlgmr.msra.gmra.mxu1 %vm600_vm3, %v1126_v45 }
  0xb2   : > { %v729_v50 = vpop.f32.mrf.mxu3  ;;  %v678_v51 = vpack.c.bf16 %v676_v49, %v676_v49  ;;  %v747_v58 = vmax.f32 %v742_v54, 0.0 }
  0xb3   : > { %v730_v53 = vadd.f32 %v729_v50, %v695_v25 }
  0xb4   : > { %681 = vst.msk [vmem:[#allocation3 + $0x4] sm:$0xf] %vm679_vm2, %v678_v51 }
  0xb5   : > { %v748_v55 = vmax.f32 %v730_v53, 0.0 }
  0xb7   : > { %v750_v56 = vpack.c.bf16 %v748_v55, %v746_v52  ;;  %v743_v57 = vpop.f32.mrf.mxu0 }
  0xb8   : > { %v744_v59 = vadd.f32 %v743_v57, %v695_v25 }
  0xb9   : > { %782 = vmatpush.bf16.msrb.mxu1 %v750_v56 }
  0xba   : > { %v749_v60 = vmax.f32 %v744_v59, 0.0 }
  0xbc   : > { %v751_v61 = vpack.c.bf16 %v749_v60, %v747_v58 }
  0xbe   : > { %796 = vmatpush.bf16.msrb.mxu2 %v751_v61 }
  0xc1   : > { %1107 = vmatmul.msk.bf16.vlgmr.msrb.gmra.mxu1 %vm600_vm3, %v1129_v62  ;;  %1108 = vmatmul.msk.bf16.vlgmr.msrb.gmra.mxu2 %vm600_vm3, %v1129_v62 }
 0x12e   : > { %v613_v0 = vpop.f32.mrf.mxu1 }
 0x12f   : > { %v614_v1 = vadd.f32 %v613_v0, %v588_v63  ;;  %v1130_v63 = vld [vmem:[#allocation3] sm:$0xff] }
 0x131   : > { %v618_v5 = vmax.f32 %v614_v1, 0.0 }
 0x136   : > { %v615_v3 = vpop.f32.mrf.mxu1 }
 0x137   : > { %v616_v4 = vadd.f32 %v615_v3, %v593_v2 }
 0x139   : > { %v619_v6 = vmax.f32 %v616_v4, 0.0 }
 0x13b   : > { %v620_v7 = vpack.c.bf16 %v619_v6, %v618_v5 }
 0x13d   : > { %621 = vxpose.xlu2.c.b16.start.end [1/1] (short) (narrow) %v620_v7, 16 }
 0x13e   : > { %v784_v8 = vpop.f32.mrf.mxu1 }
 0x13f   : > { %v785_v10 = vadd.f32 %v784_v8, %v1461_v26 }
 0x141   : > { %v803_v13 = vmax.f32 %v785_v10, 0.0 }
 0x144   : > { %v798_v9 = vpop.f32.mrf.mxu2 }
 0x145   : > { %v799_v15 = vadd.f32 %v798_v9, %v1461_v26  ;;  %v919_v9 = vld [vmem:[%s1546_s12] sm:$0xf] }
 0x146   : > { %v786_v11 = vpop.f32.mrf.mxu1 }
 0x147   : > { %v787_v12 = vadd.f32 %v786_v11, %v1463_v28  ;;  %v804_v19 = vmax.f32 %v799_v15, 0.0  ;;  %v926_v11 = vpop.permute.xlu0 %925 }
 0x149   : > { %v805_v14 = vmax.f32 %v787_v12, 0.0 }
 0x14b   : > { %v807_v16 = vpack.c.bf16 %v805_v14, %v803_v13 }
 0x14c   : > { %v800_v17 = vpop.f32.mrf.mxu2 }
 0x14d   : > { %v801_v18 = vadd.f32 %v800_v17, %v1463_v28  ;;  %820 = vmatpush.bf16.msrb.mxu3 %v807_v16 }
 0x14f   : > { %v806_v20 = vmax.f32 %v801_v18, 0.0 }
 0x151   : > { %v808_v21 = vpack.c.bf16 %v806_v20, %v804_v19 }
 0x153   : > { %833 = vmatpush.bf16.msra.mxu0 %v808_v21 }
 0x1de   : > { %v629_v22 = vpop.trf.xlu2 }
 0x1df   : > { %638 = vst.msk [vmem:[#allocation2] sm:$0xf] %vm637_vm4, %v629_v22 }
 0x1e6   : > { %v809_v23 = vld [vmem:[#allocation2] sm:$0xf] }
 0x1e7   : > { %1109 = vmatmul.msk.bf16.vlgmr.msrb.gmra.mxu3 %vm600_vm3, %v809_v23  ;;  %1110 = vmatmul.msk.bf16.vlgmr.msra.gmra.mxu0 %vm600_vm3, %v809_v23 }
 0x264   : > { %v835_v24 = vpop.f32.mrf.mxu0 }
 0x265   : > { %v845_v25 = vrot.slane %v835_v24, 4 }
 0x267   : > { %v846_v26 = vmax.f32 %v835_v24, %v845_v25 }
 0x269   : > { %v847_v27 = vrot.slane %v846_v26, 2 }
 0x26a   : > { %v822_v29 = vpop.f32.mrf.mxu3 }
 0x26b   : > { %v848_v30 = vmax.f32 %v846_v26, %v847_v27  ;;  %v839_v28 = vrot.slane %v822_v29, 4 }
 0x26c   : > { %v837_v31 = vpop.f32.mrf.mxu0 }
 0x26d   : > { %v849_v32 = vrot.slane %v848_v30, 1  ;;  %v840_v33 = vmax.f32 %v822_v29, %v839_v28 }
 0x26f   : > { %v850_v34 = vmax.f32 %v848_v30, %v849_v32  ;;  %v841_v35 = vrot.slane %v840_v33, 2 }
 0x271   : > { %v852_v36 = vsub.f32 %v835_v24, %v850_v34  ;;  %v842_v37 = vmax.f32 %v840_v33, %v841_v35 }
 0x272   : > { %v824_v38 = vpop.f32.mrf.mxu3 }
 0x273   : > { %v855_v39 = vmul.f32 1.442695, %v852_v36  ;;  %v843_v40 = vrot.slane %v842_v37, 1 }
 0x275   : > { %1191 = vpow2.f32 %v855_v39  ;;  %v844_v41 = vmax.f32 %v842_v37, %v843_v40 }
 0x277   : > { %v851_v42 = vsub.f32 %v822_v29, %v844_v41 }
 0x279   : > { %v853_v43 = vmul.f32 1.442695, %v851_v42 }
 0x27b   : > { %v1192_v44 = vpop.eup %1191  ;;  %1193 = vpow2.f32 %v853_v43 }
 0x27c   : > { %v863_v45 = vrot.slane %v1192_v44, 4 }
 0x27e   : > { %v864_v46 = vadd.f32 %v1192_v44, %v863_v45 }
 0x280   : > { %v865_v47 = vrot.slane %v864_v46, 2 }
 0x281   : > { %v1194_v48 = vpop.eup %1193 }
 0x282   : > { %v866_v49 = vadd.f32 %v865_v47, %v864_v46  ;;  %v857_v50 = vrot.slane %v1194_v48, 4 }
 0x284   : > { %v867_v51 = vrot.slane %v866_v49, 1  ;;  %v858_v52 = vadd.f32 %v1194_v48, %v857_v50 }
 0x286   : > { %v868_v53 = vadd.f32 %v867_v51, %v866_v49  ;;  %v859_v54 = vrot.slane %v858_v52, 2 }
 0x288   : > { %1195 = vrcp.f32 %v868_v53  ;;  %v860_v55 = vadd.f32 %v859_v54, %v858_v52 }
 0x28a   : > { %v861_v56 = vrot.slane %v860_v55, 1 }
 0x28c   : > { %v862_v57 = vadd.f32 %v861_v56, %v860_v55 }
 0x28e   : > { %v1196_v58 = vpop.eup %1195  ;;  %1197 = vrcp.f32 %v862_v57 }
 0x28f   : > { %v872_v59 = vmul.f32 %v1196_v58, %v1192_v44 }
 0x291   : > { %v876_v60 = vpack.c.bf16 %v872_v59, %v872_v59 }
 0x293   : > { %v889_v61 = vsel %vm560_vm0, %v876_v60, 0 }
 0x294   : > { %v1198_v62 = vpop.eup %1197  ;;  %912 = vmatpush.bf16.msra.mxu2 %v889_v61 }
 0x295   : > { %v871_v0 = vmul.f32 %v1198_v62, %v1194_v48 }
 0x297   : > { %1116 = vmatmul.msk.bf16.vlgmr.msra.gmra.mxu2 %vm556_vm1, %v1130_v63  ;;  %v875_v1 = vpack.c.bf16 %v871_v0, %v871_v0 }
 0x299   : > { %v886_v2 = vsel %vm560_vm0, %v875_v1, 0 }
 0x29a   : > { %898 = vmatpush.bf16.msra.mxu1 %v886_v2 }
 0x29d   : > { %1115 = vmatmul.msk.bf16.vlgmr.msra.gmra.mxu1 %vm556_vm1, %v1130_v63 }
 0x31a   : > { %v900_v3 = vpop.f32.mrf.mxu1  ;;  %v914_v4 = vpop.f32.mrf.mxu2 }
 0x322   : > { %v902_v5 = vpop.f32.mrf.mxu1  ;;  %v916_v6 = vpop.f32.mrf.mxu2 }
 0x323   : > { %v920_v7 = vpack.c.bf16 %v902_v5, %v900_v3  ;;  %v921_v8 = vpack.c.bf16 %v916_v6, %v914_v4 }
 0x325   : > { %938 = vmatpush.bf16.msra.mxu3 %v920_v7  ;;  %951 = vmatpush.bf16.msrb.mxu0 %v921_v8 }
 0x328   : > { %1117 = vmatmul.msk.bf16.vlgmr.msra.gmra.mxu3 %vm600_vm3, %v919_v9  ;;  %1118 = vmatmul.msk.bf16.vlgmr.msrb.gmra.mxu0 %vm600_vm3, %v919_v9 }
 0x3a5   : > { %v953_v10 = vpop.f32.mrf.mxu0 }
 0x3a6   : > { %v954_v12 = vadd.f32 %v953_v10, %v926_v11 }
 0x3a8   : > { %v958_v16 = vmax.f32 %v954_v12, 0.0 }
 0x3ab   : > { %v940_v13 = vpop.f32.mrf.mxu3 }
 0x3ac   : > { %v941_v14 = vadd.f32 %v940_v13, %v926_v11 }
 0x3ad   : > { %v955_v15 = vpop.f32.mrf.mxu0 }
 0x3ae   : > { %v957_v17 = vmax.f32 %v941_v14, 0.0 }
 0x3b0   : > { %v959_v18 = vpack.c.bf16 %v958_v16, %v957_v17 }
 0x3b2   : > { %960 = vst [vmem:[%s512_s18] sm:$0xff] %v959_v18 }
 0x3b3   : > { %v942_v19 = vpop.f32.mrf.mxu3 }
 0x3b4   : > { %1226 = shalt.err (!%p1223_p5)
}
 0x3b5   : > { %1132 = dma.vmem_to_hbm [thread:$0]  (%p1395_p4), %s979_s21, 128, %s981_s23, %s962_s16  }
 0x3b6 PF: > { %s1569_s28 = sld [smem:[#allocation10_spill]] }
 0x3b7   : > { %s1570_s17 = sld [smem:[#allocation7_spill]] }
 0x3bc   : > { %p1138_p6 = scmp.ge.s32.totalorder %s1569_s28, 2 }
 0x3bd   : > { %s992_s18 = sand.u32 1, %s1570_s17  }
 0x3be   : > { %p1135_p7 = pnand %p1138_p6, %p1402_p8  ;;  %s993_s22 = scalar_lea.sflag [#allocation5], %s992_s18 }
 0x3c0   : > { %p1136_p9 = pneg %p1135_p7 }
 0x3c2   : > { %1252 = dma.done.wait (%p1136_p9), %s993_s22, 128  }
 0x3c3   : > { %1254 = vsyncadd (%p1136_p9), %s993_s22, 4294967168  ;;  %s27_s18 = sadd.s32 1, %s1569_s28   ;;  %s1572_s25 = sld [smem:[#allocation8_spill]] }
 0x3c4   : > { %p24_p10 = scmp.ge.s32.totalorder %s27_s18, 4   ;;  %s1573_s15 = sld [smem:[#allocation14_spill]] }
 0x3c5   : > { %s1574_s16 = sld [smem:[#allocation9_spill]]  ;;  %s1576_s29 = smov %s1261_s30 }
 0x3c6   : > { %s1575_s17 = sld [smem:[#allocation11_spill]]  ;;  %26 = sbr.rel (!%p24_p10) target bundleno = 4 (0x4), region = 118 }
 0x3c9   : > { %s1577_s30 = smov %s1572_s25 }
 0x3cb   :  { %999 = vsyncpa [#allocation5], 1 }
 0x3cc   :  { %1001 = vsyncpa [#allocation5 + $0x1], 1 }

// kernel: tpu_custom_call.1
= control target key start
LH: loop header
LB: loop body
LE: loop exit
PB: predicated region body
PF: predicated region fallthrough
CT: control target
= control target key end

     0   :  { %19 = vsyncpa [#allocation5], 0  ;;  %s1534_s0 = inlined_call_operand.vmem [shape: bf16[2,8,256], index: 0, kind: input, shape index: {}]   ;;  %s1535_s1 = inlined_call_operand.vmem [shape: bf16[2,8,8], index: 1, kind: input, shape index: {}]   ;;  %s1536_s2 = inlined_call_operand.vmem [shape: bf16[16,8], index: 2, kind: input, shape index: {}]   ;;  %s1537_s3 = inlined_call_operand.vmem [shape: f32[16,1], index: 3, kind: input, shape index: {}]   ;;  %s1538_s4 = inlined_call_operand.vmem [shape: bf16[16,16], index: 4, kind: input, shape index: {}]   ;;  %s1539_s5 = inlined_call_operand.vmem [shape: f32[16,1], index: 5, kind: input, shape index: {}]   ;;  %s1540_s6 = inlined_call_operand.vmem [shape: bf16[16,8], index: 6, kind: input, shape index: {}]   ;;  %s1541_s7 = inlined_call_operand.vmem [shape: f32[16,1], index: 7, kind: input, shape index: {}]   ;;  %s1542_s8 = inlined_call_operand.vmem [shape: bf16[16,16], index: 8, kind: input, shape index: {}]   ;;  %s1543_s9 = inlined_call_operand.vmem [shape: f32[16,1], index: 9, kind: input, shape index: {}]   ;;  %s1544_s10 = inlined_call_operand.vmem [shape: bf16[16,8], index: 10, kind: input, shape index: {}]   ;;  %s1545_s11 = inlined_call_operand.vmem [shape: f32[16,1], index: 11, kind: input, shape index: {}]   ;;  %s1546_s12 = inlined_call_operand.vmem [shape: bf16[8,16], index: 12, kind: input, shape index: {}]   ;;  %s1547_s13 = inlined_call_operand.vmem [shape: f32[8,1], index: 13, kind: input, shape index: {}]   ;;  %s1548_s14 = inlined_call_operand.hbm [shape: bf16[2,8,256], index: 14, kind: output, shape index: {}]  }
   0x1   :  { %21 = vsyncpa [#allocation5 + $0x1], 0  ;;  %s1355_s29 = smov 0   ;;  %s1357_s30 = smov 0  }
   0x2   :  { %s1359_s15 = smov 0   ;;  %s1361_s16 = smov 0  }
   0x3   :  { %s1363_s17 = smov 0   ;;  %s1365_s18 = smov 0  }
   0x4 LB: > { %1558 = sst [smem:[#allocation7_spill]] %s1257_s29  ;;  %s1073_s19 = sadd.s32 4294967295, %s1277_s18   ;;  %s1277_s18 = sphi %s1365_s18, %s27_s18   ;;  %s1273_s17 = sphi %s1363_s17, %s1575_s17   ;;  %s1269_s16 = sphi %s1361_s16, %s1574_s16   ;;  %s1265_s15 = sphi %s1359_s15, %s1573_s15   ;;  %s1261_s30 = sphi %s1357_s30, %s1577_s30   ;;  %s1257_s29 = sphi %s1355_s29, %s1576_s29  }
   0x5   : > { %1559 = sst [smem:[#allocation8_spill]] %s1265_s15  ;;  %s1074_s20 = sadd.s32 4294967294, %s1277_s18  }
   0x6   : > { %1560 = sst [smem:[#allocation9_spill]] %s1273_s17  ;;  %s46_s21 = sadd.s32 1, %s1273_s17 }
   0x7   : > { %1561 = sst [smem:[#allocation10_spill]] %s1277_s18  ;;  %s365_s22 = sadd.s32 1, %s1265_s15 }
   0x8   : > { %p48_p0 = scmp.ge.s32.totalorder %s46_s21, 2  ;;  %p375_p1 = scmp.ne.s32.totalorder %s1265_s15, %s1261_s30 }
   0x9   : > { %p376_p2 = scmp.eq.s32.totalorder %s1073_s19, 1  ;;  %p381_p3 = scmp.ne.s32.totalorder %s1261_s30, %s1257_s29 }
   0xa   : > { %s1579_s21 = smov (%p48_p0, %s46_s21), 0  ;;  %p382_p5 = scmp.eq.s32.totalorder %s1074_s20, 1 }
   0xb   : > { %1562 = sst [smem:[#allocation11_spill]] %s1579_s21  ;;  %p1395_p4 = por %p376_p2, %p375_p1 }
   0xc   : > { %s360_s24 = ssub.s32 %s1273_s17, %s1579_s21  ;;  %p1077_p6 = scmp.ge.s32.totalorder %s1277_s18, 1 }
   0xd   : > { %s1563_s23 = scalar_select %p1395_p4, 1, 0 }
   0xe   : > { %p363_p7 = scmp.eq.s32.totalorder %s360_s24, 0  ;;  %p1402_p8 = por %p382_p5, %p381_p3 }
   0xf   : > { %1564 = sst [smem:[#allocation12_spill]] %s1563_s23  ;;  %p458_p9 = scmp.lt.s32.totalorder %s1277_s18, 3 }
  0x10   : > { %s1565_s25 = scalar_select %p1402_p8, 1, 0 }
  0x11   : > { %s1408_s26 = scalar_select %p363_p7, %s1265_s15, %s365_s22  }
  0x12   : > { %1566 = sst [smem:[#allocation13_spill]] %s1565_s25  ;;  %p459_p10 = pnand %p1077_p6, %p458_p9 }
  0x13   : > { %1567 = sst [smem:[#allocation14_spill]] %s1408_s26  ;;  %p515_p11 = scmp.lt.s32.totalorder (!%p459_p10), %s1269_s16, 1 }
  0x14   : > { %462 = sbr.rel (%p459_p10) target bundleno = 950 (0x3b6), region = 76  ;;  %s1131_s20 = sshll.u32 (!%p459_p10), %s1269_s16, 3 }
  0x15   : > { %s976_s15 = scalar_lea.hbm (!%p459_p10), %s1548_s14, %s1131_s20 }
  0x16   : > { %s980_s23 = sshll.u32 (!%p459_p10), %s976_s15, 4  ;;  %s981_s23 = int_to_ptr.hbm [resolvable:$true] %s980_s23 }
  0x19   : > { %v539_v0 = vld [vmem:[%s1541_s7] sm:$0xff]  ;;  %v1279_v1 = vmov 0   ;;  %s516_s24 = scalar_select %p515_p11, %s1269_s16, 1  ;;  %vm560_vm0 = vcmask 1043456   ;;  %v540_v4 = vld [vmem:[%s1541_s7 + $0x8] sm:$0xff]  ;;  %vm556_vm1 = vcmask 64512  }
  0x1a   : > { %1188 = vset.pattern.permute.xlu0 %v1279_v1  ;;  %1189 = vset.pattern.permute.xlu1 %v1279_v1  ;;  %v685_v2 = vld [vmem:[%s1537_s3] sm:$0xff]  ;;  %v686_v10 = vld [vmem:[%s1537_s3 + $0x8] sm:$0xff]  ;;  %vm679_vm2 = vcmask 60416   ;;  %vm600_vm3 = vcmask 130048   ;;  %vm637_vm4 = vcmask 125952  }
  0x1b   : > { %543 = vperm.xlu0 %1188, %v539_v0   ;;  %689 = vperm.xlu1 %1189, %v685_v2   ;;  %s1081_s22 = sshll.u32 %s516_s24, 2  ;;  %s1124_s21 = sshll.u32 %s516_s24, 3  ;;  %v1125_v7 = vld [vmem:[%s1540_s6] sm:$0xff]  ;;  %v755_v18 = vld [vmem:[%s1539_s5 + $0x8] sm:$0xff] }
  0x1c   : > { %1190 = vset.pattern.permute.xlu2 %v1279_v1  ;;  %s528_s28 = scalar_lea.vmem %s1535_s1, %s1081_s22  ;;  %s522_s25 = scalar_lea.vmem %s1534_s0, %s1124_s21  ;;  %v1127_v8 = vld [vmem:[%s1544_s10] sm:$0xff]  ;;  %v642_v20 = vld [vmem:[%s1545_s11 + $0x8] sm:$0xff] }
  0x1d   : > { %v536_v3 = vld [vmem:[%s528_s28] sm:$0xf]  ;;  %v584_v35 = vld [vmem:[%s1543_s9 + $0x8] sm:$0xff]  ;;  %s510_s28 = sand.u32 1, %s1261_s30  }
  0x1e   : > { %v682_v5 = vld [vmem:[%s522_s25] sm:$0xff]  ;;  %v562_v6 = vsel %vm560_vm0, %v536_v3, 0  ;;  %s1078_s19 = sshll.u32 %s510_s28, 3  ;;  %s962_s16 = scalar_lea.sflag [#allocation5], %s510_s28 }
  0x1f   : > { %v703_v9 = vunpack.c.l.b16 %v682_v5  ;;  %v704_v11 = vunpack.c.h.b16 %v682_v5  ;;  %571 = vmatpush.bf16.msra.mxu0 %v562_v6  ;;  %668 = vmatpush.bf16.msra.mxu2 %v562_v6  ;;  %v1128_v15 = vld [vmem:[%s1536_s2] sm:$0xff]  ;;  %s512_s18 = scalar_lea.vmem [#allocation4], %s1078_s19  ;;  %s1213_s25 = sshra.s32 %s981_s23, 4  ;;  %s1214_s25 = int_to_ptr.hbm [resolvable:$true] %s1213_s25 }
  0x20   : > { %v754_v17 = vld [vmem:[%s1539_s5] sm:$0xff]  ;;  %s978_s21 = sshll.u32 %s512_s18, 4  ;;  %s1215_s26 = scalar_lea.hbm %s1214_s25, 8  ;;  %s979_s21 = int_to_ptr.vmem [resolvable:$true] %s978_s21 }
  0x21   : > { %v705_v12 = vpack.c.b16 %v703_v9, %v703_v9  ;;  %v706_v13 = vpack.c.b16 %v704_v11, %v704_v11  ;;  %v641_v19 = vld [vmem:[%s1545_s11] sm:$0xff]  ;;  %p1216_p12 = scmp.ne.s32.totalorder %s1214_s25, %s1215_s26  ;;  %s1219_s19 = scalar_lea.hbm %s1548_s14, 16 }
  0x22   : > { %1086 = vmatmul.msk.bf16.vlgmr.msra.gmra.mxu0 %vm556_vm1, %v1125_v7  ;;  %1096 = vmatmul.msk.bf16.vlgmr.msra.gmra.mxu2 %vm556_vm1, %v1127_v8  ;;  %v922_v21 = vld [vmem:[%s1547_s13] sm:$0xff]  ;;  %p1220_p1 = scmp.lt.s32.totalorder %s1214_s25, %s1548_s14  ;;  %p1221_p2 = scmp.lt.s32.totalorder %s1219_s19, %s1215_s26 }
  0x23   : > { %548 = vperm.xlu0 %1188, %v540_v4   ;;  %694 = vperm.xlu1 %1189, %v686_v10   ;;  %v713_v14 = vsel %vm560_vm0, %v705_v12, 0  ;;  %v716_v16 = vsel %vm560_vm0, %v706_v13, 0  ;;  %v583_v29 = vld [vmem:[%s1543_s9] sm:$0xff]  ;;  %p1217_p13 = pnand %p1216_p12, %p1395_p4 }
  0x24   : > { %725 = vmatpush.bf16.msra.mxu3 %v713_v14  ;;  %739 = vmatpush.bf16.msrb.mxu0 %v716_v16  ;;  %v1126_v45 = vld [vmem:[%s1542_s8] sm:$0xff]  ;;  %p1222_p3 = por %p1221_p2, %p1220_p1 }
  0x25   : > { %587 = vperm.xlu2 %1190, %v583_v29   ;;  %v1129_v62 = vld [vmem:[%s1538_s4] sm:$0xff]  ;;  %p1218_p0 = pneg %p1217_p13 }
  0x27   : > { %1101 = vmatmul.msk.bf16.vlgmr.msra.gmra.mxu3 %vm556_vm1, %v1128_v15  ;;  %p1223_p5 = pnand %p1222_p3, %p1218_p0 }
  0x2b   : > { %758 = vperm.xlu0 %1188, %v754_v17   ;;  %763 = vperm.xlu1 %1189, %v755_v18  }
  0x2d   : > { %592 = vperm.xlu2 %1190, %v584_v35  }
  0x32   : > { %1102 = vmatmul.msk.bf16.vlgmr.msrb.gmra.mxu0 %vm556_vm1, %v1128_v15 }
  0x33   : > { %645 = vperm.xlu0 %1188, %v641_v19   ;;  %650 = vperm.xlu1 %1189, %v642_v20  }
  0x3b   : > { %925 = vperm.xlu0 %1188, %v922_v21  }
  0x7f   : > { %v588_v63 = vpop.permute.xlu2 %587 }
  0x87   : > { %v593_v2 = vpop.permute.xlu2 %592 }
  0x8d   : > { %v544_v22 = vpop.permute.xlu0 %543  ;;  %v690_v23 = vpop.permute.xlu1 %689 }
  0x95   : > { %v549_v24 = vpop.permute.xlu0 %548  ;;  %v695_v25 = vpop.permute.xlu1 %694 }
  0x9d   : > { %v1461_v26 = vpop.permute.xlu0 %758  ;;  %v1463_v28 = vpop.permute.xlu1 %763 }
  0x9f   : > { %v573_v27 = vpop.f32.mrf.mxu0 }
  0xa0   : > { %v574_v32 = vadd.f32 %v573_v27, %v544_v22 }
  0xa2   : > { %v578_v39 = vmax.f32 %v574_v32, 0.0 }
  0xa5   : > { %v646_v30 = vpop.permute.xlu0 %645  ;;  %v670_v31 = vpop.f32.mrf.mxu2 }
  0xa6   : > { %v671_v33 = vadd.f32 %v670_v31, %v646_v30  ;;  %v651_v42 = vpop.permute.xlu1 %650 }
  0xa7   : > { %v575_v34 = vpop.f32.mrf.mxu0 }
  0xa8   : > { %v675_v36 = vmax.f32 %v671_v33, 0.0  ;;  %v576_v37 = vadd.f32 %v575_v34, %v549_v24 }
  0xaa   : > { %v727_v38 = vpop.f32.mrf.mxu3  ;;  %v677_v40 = vpack.c.bf16 %v675_v36, %v675_v36  ;;  %v579_v41 = vmax.f32 %v576_v37, 0.0 }
  0xab   : > { %v728_v47 = vadd.f32 %v727_v38, %v690_v23 }
  0xac   : > { %680 = vst.msk [vmem:[#allocation3] sm:$0xf] %vm679_vm2, %v677_v40  ;;  %v580_v43 = vpack.c.bf16 %v579_v41, %v578_v39 }
  0xad   : > { %v672_v44 = vpop.f32.mrf.mxu2  ;;  %v746_v52 = vmax.f32 %v728_v47, 0.0 }
  0xae   : > { %v673_v46 = vadd.f32 %v672_v44, %v651_v42  ;;  %611 = vmatpush.bf16.msra.mxu1 %v580_v43 }
  0xaf   : > { %v741_v48 = vpop.f32.mrf.mxu0 }
  0xb0   : > { %v676_v49 = vmax.f32 %v673_v46, 0.0  ;;  %v742_v54 = vadd.f32 %v741_v48, %v690_v23 }
  0xb1   : > { %1091 = vmatmul.msk.bf16.vlgmr.msra.gmra.mxu1 %vm600_vm3, %v1126_v45 }
  0xb2   : > { %v729_v50 = vpop.f32.mrf.mxu3  ;;  %v678_v51 = vpack.c.bf16 %v676_v49, %v676_v49  ;;  %v747_v58 = vmax.f32 %v742_v54, 0.0 }
  0xb3   : > { %v730_v53 = vadd.f32 %v729_v50, %v695_v25 }
  0xb4   : > { %681 = vst.msk [vmem:[#allocation3 + $0x4] sm:$0xf] %vm679_vm2, %v678_v51 }
  0xb5   : > { %v748_v55 = vmax.f32 %v730_v53, 0.0 }
  0xb7   : > { %v750_v56 = vpack.c.bf16 %v748_v55, %v746_v52  ;;  %v743_v57 = vpop.f32.mrf.mxu0 }
  0xb8   : > { %v744_v59 = vadd.f32 %v743_v57, %v695_v25 }
  0xb9   : > { %782 = vmatpush.bf16.msrb.mxu1 %v750_v56 }
  0xba   : > { %v749_v60 = vmax.f32 %v744_v59, 0.0 }
  0xbc   : > { %v751_v61 = vpack.c.bf16 %v749_v60, %v747_v58 }
  0xbe   : > { %796 = vmatpush.bf16.msrb.mxu2 %v751_v61 }
  0xc1   : > { %1107 = vmatmul.msk.bf16.vlgmr.msrb.gmra.mxu1 %vm600_vm3, %v1129_v62  ;;  %1108 = vmatmul.msk.bf16.vlgmr.msrb.gmra.mxu2 %vm600_vm3, %v1129_v62 }
 0x12e   : > { %v613_v0 = vpop.f32.mrf.mxu1 }
 0x12f   : > { %v614_v1 = vadd.f32 %v613_v0, %v588_v63  ;;  %v1130_v63 = vld [vmem:[#allocation3] sm:$0xff] }
 0x131   : > { %v618_v5 = vmax.f32 %v614_v1, 0.0 }
 0x136   : > { %v615_v3 = vpop.f32.mrf.mxu1 }
 0x137   : > { %v616_v4 = vadd.f32 %v615_v3, %v593_v2 }
 0x139   : > { %v619_v6 = vmax.f32 %v616_v4, 0.0 }
 0x13b   : > { %v620_v7 = vpack.c.bf16 %v619_v6, %v618_v5 }
 0x13d   : > { %621 = vxpose.xlu2.c.b16.start.end [1/1] (short) (narrow) %v620_v7, 16 }
 0x13e   : > { %v784_v8 = vpop.f32.mrf.mxu1 }
 0x13f   : > { %v785_v10 = vadd.f32 %v784_v8, %v1461_v26 }
 0x141   : > { %v803_v13 = vmax.f32 %v785_v10, 0.0 }
 0x144   : > { %v798_v9 = vpop.f32.mrf.mxu2 }
 0x145   : > { %v799_v15 = vadd.f32 %v798_v9, %v1461_v26  ;;  %v919_v9 = vld [vmem:[%s1546_s12] sm:$0xf] }
 0x146   : > { %v786_v11 = vpop.f32.mrf.mxu1 }
 0x147   : > { %v787_v12 = vadd.f32 %v786_v11, %v1463_v28  ;;  %v804_v19 = vmax.f32 %v799_v15, 0.0  ;;  %v926_v11 = vpop.permute.xlu0 %925 }
 0x149   : > { %v805_v14 = vmax.f32 %v787_v12, 0.0 }
 0x14b   : > { %v807_v16 = vpack.c.bf16 %v805_v14, %v803_v13 }
 0x14c   : > { %v800_v17 = vpop.f32.mrf.mxu2 }
 0x14d   : > { %v801_v18 = vadd.f32 %v800_v17, %v1463_v28  ;;  %820 = vmatpush.bf16.msrb.mxu3 %v807_v16 }
 0x14f   : > { %v806_v20 = vmax.f32 %v801_v18, 0.0 }
 0x151   : > { %v808_v21 = vpack.c.bf16 %v806_v20, %v804_v19 }
 0x153   : > { %833 = vmatpush.bf16.msra.mxu0 %v808_v21 }
 0x1de   : > { %v629_v22 = vpop.trf.xlu2 }
 0x1df   : > { %638 = vst.msk [vmem:[#allocation2] sm:$0xf] %vm637_vm4, %v629_v22 }
 0x1e6   : > { %v809_v23 = vld [vmem:[#allocation2] sm:$0xf] }
 0x1e7   : > { %1109 = vmatmul.msk.bf16.vlgmr.msrb.gmra.mxu3 %vm600_vm3, %v809_v23  ;;  %1110 = vmatmul.msk.bf16.vlgmr.msra.gmra.mxu0 %vm600_vm3, %v809_v23 }
 0x264   : > { %v835_v24 = vpop.f32.mrf.mxu0 }
 0x265   : > { %v845_v25 = vrot.slane %v835_v24, 4 }
 0x267   : > { %v846_v26 = vmax.f32 %v835_v24, %v845_v25 }
 0x269   : > { %v847_v27 = vrot.slane %v846_v26, 2 }
 0x26a   : > { %v822_v29 = vpop.f32.mrf.mxu3 }
 0x26b   : > { %v848_v30 = vmax.f32 %v846_v26, %v847_v27  ;;  %v839_v28 = vrot.slane %v822_v29, 4 }
 0x26c   : > { %v837_v31 = vpop.f32.mrf.mxu0 }
 0x26d   : > { %v849_v32 = vrot.slane %v848_v30, 1  ;;  %v840_v33 = vmax.f32 %v822_v29, %v839_v28 }
 0x26f   : > { %v850_v34 = vmax.f32 %v848_v30, %v849_v32  ;;  %v841_v35 = vrot.slane %v840_v33, 2 }
 0x271   : > { %v852_v36 = vsub.f32 %v835_v24, %v850_v34  ;;  %v842_v37 = vmax.f32 %v840_v33, %v841_v35 }
 0x272   : > { %v824_v38 = vpop.f32.mrf.mxu3 }
 0x273   : > { %v855_v39 = vmul.f32 1.442695, %v852_v36  ;;  %v843_v40 = vrot.slane %v842_v37, 1 }
 0x275   : > { %1191 = vpow2.f32 %v855_v39  ;;  %v844_v41 = vmax.f32 %v842_v37, %v843_v40 }
 0x277   : > { %v851_v42 = vsub.f32 %v822_v29, %v844_v41 }
 0x279   : > { %v853_v43 = vmul.f32 1.442695, %v851_v42 }
 0x27b   : > { %v1192_v44 = vpop.eup %1191  ;;  %1193 = vpow2.f32 %v853_v43 }
 0x27c   : > { %v863_v45 = vrot.slane %v1192_v44, 4 }
 0x27e   : > { %v864_v46 = vadd.f32 %v1192_v44, %v863_v45 }
 0x280   : > { %v865_v47 = vrot.slane %v864_v46, 2 }
 0x281   : > { %v1194_v48 = vpop.eup %1193 }
 0x282   : > { %v866_v49 = vadd.f32 %v865_v47, %v864_v46  ;;  %v857_v50 = vrot.slane %v1194_v48, 4 }
 0x284   : > { %v867_v51 = vrot.slane %v866_v49, 1  ;;  %v858_v52 = vadd.f32 %v1194_v48, %v857_v50 }
 0x286   : > { %v868_v53 = vadd.f32 %v867_v51, %v866_v49  ;;  %v859_v54 = vrot.slane %v858_v52, 2 }
 0x288   : > { %1195 = vrcp.f32 %v868_v53  ;;  %v860_v55 = vadd.f32 %v859_v54, %v858_v52 }
 0x28a   : > { %v861_v56 = vrot.slane %v860_v55, 1 }
 0x28c   : > { %v862_v57 = vadd.f32 %v861_v56, %v860_v55 }
 0x28e   : > { %v1196_v58 = vpop.eup %1195  ;;  %1197 = vrcp.f32 %v862_v57 }
 0x28f   : > { %v872_v59 = vmul.f32 %v1196_v58, %v1192_v44 }
 0x291   : > { %v876_v60 = vpack.c.bf16 %v872_v59, %v872_v59 }
 0x293   : > { %v889_v61 = vsel %vm560_vm0, %v876_v60, 0 }
 0x294   : > { %v1198_v62 = vpop.eup %1197  ;;  %912 = vmatpush.bf16.msra.mxu2 %v889_v61 }
 0x295   : > { %v871_v0 = vmul.f32 %v1198_v62, %v1194_v48 }
 0x297   : > { %1116 = vmatmul.msk.bf16.vlgmr.msra.gmra.mxu2 %vm556_vm1, %v1130_v63  ;;  %v875_v1 = vpack.c.bf16 %v871_v0, %v871_v0 }
 0x299   : > { %v886_v2 = vsel %vm560_vm0, %v875_v1, 0 }
 0x29a   : > { %898 = vmatpush.bf16.msra.mxu1 %v886_v2 }
 0x29d   : > { %1115 = vmatmul.msk.bf16.vlgmr.msra.gmra.mxu1 %vm556_vm1, %v1130_v63 }
 0x31a   : > { %v900_v3 = vpop.f32.mrf.mxu1  ;;  %v914_v4 = vpop.f32.mrf.mxu2 }
 0x322   : > { %v902_v5 = vpop.f32.mrf.mxu1  ;;  %v916_v6 = vpop.f32.mrf.mxu2 }
 0x323   : > { %v920_v7 = vpack.c.bf16 %v902_v5, %v900_v3  ;;  %v921_v8 = vpack.c.bf16 %v916_v6, %v914_v4 }
 0x325   : > { %938 = vmatpush.bf16.msra.mxu3 %v920_v7  ;;  %951 = vmatpush.bf16.msrb.mxu0 %v921_v8 }
 0x328   : > { %1117 = vmatmul.msk.bf16.vlgmr.msra.gmra.mxu3 %vm600_vm3, %v919_v9  ;;  %1118 = vmatmul.msk.bf16.vlgmr.msrb.gmra.mxu0 %vm600_vm3, %v919_v9 }
 0x3a5   : > { %v953_v10 = vpop.f32.mrf.mxu0 }
 0x3a6   : > { %v954_v12 = vadd.f32 %v953_v10, %v926_v11 }
 0x3a8   : > { %v958_v16 = vmax.f32 %v954_v12, 0.0 }
 0x3ab   : > { %v940_v13 = vpop.f32.mrf.mxu3 }
 0x3ac   : > { %v941_v14 = vadd.f32 %v940_v13, %v926_v11 }
 0x3ad   : > { %v955_v15 = vpop.f32.mrf.mxu0 }
 0x3ae   : > { %v957_v17 = vmax.f32 %v941_v14, 0.0 }
 0x3b0   : > { %v959_v18 = vpack.c.bf16 %v958_v16, %v957_v17 }
 0x3b2   : > { %960 = vst [vmem:[%s512_s18] sm:$0xff] %v959_v18 }
 0x3b3   : > { %v942_v19 = vpop.f32.mrf.mxu3 }
 0x3b4   : > { %1226 = shalt.err (!%p1223_p5)
}
 0x3b5   : > { %1132 = dma.vmem_to_hbm [thread:$0]  (%p1395_p4), %s979_s21, 128, %s981_s23, %s962_s16  }
 0x3b6 PF: > { %s1569_s28 = sld [smem:[#allocation10_spill]] }
 0x3b7   : > { %s1570_s17 = sld [smem:[#allocation7_spill]] }
 0x3bc   : > { %p1138_p6 = scmp.ge.s32.totalorder %s1569_s28, 2 }
 0x3bd   : > { %s992_s18 = sand.u32 1, %s1570_s17  }
 0x3be   : > { %p1135_p7 = pnand %p1138_p6, %p1402_p8  ;;  %s993_s22 = scalar_lea.sflag [#allocation5], %s992_s18 }
 0x3c0   : > { %p1136_p9 = pneg %p1135_p7 }
 0x3c2   : > { %1252 = dma.done.wait (%p1136_p9), %s993_s22, 128  }
 0x3c3   : > { %1254 = vsyncadd (%p1136_p9), %s993_s22, 4294967168  ;;  %s27_s18 = sadd.s32 1, %s1569_s28   ;;  %s1572_s25 = sld [smem:[#allocation8_spill]] }
 0x3c4   : > { %p24_p10 = scmp.ge.s32.totalorder %s27_s18, 4   ;;  %s1573_s15 = sld [smem:[#allocation14_spill]] }
 0x3c5   : > { %s1574_s16 = sld [smem:[#allocation9_spill]]  ;;  %s1576_s29 = smov %s1261_s30 }
 0x3c6   : > { %s1575_s17 = sld [smem:[#allocation11_spill]]  ;;  %26 = sbr.rel (!%p24_p10) target bundleno = 4 (0x4), region = 118 }
 0x3c9   : > { %s1577_s30 = smov %s1572_s25 }
 0x3cb   :  { %999 = vsyncpa [#allocation5], 1 }
 0x3cc   :  { %1001 = vsyncpa [#allocation5 + $0x1], 1 }

</bundles_post_ra>
